<compile_context>
chip_gen: v7x
topology: tpu7x:2x2x1
jax: 0.10.0
libtpu: 0.0.40
codegen_flags: <defaults>
</compile_context>

<pallas_src>
import functools

import jax
import jax.numpy as jnp
from jax.experimental import pallas as pl
from jax.experimental.pallas import tpu as pltpu

# ----------------------- small synthetic LLaMA config -----------------------
VOCAB = 256
D_MODEL = 128                      # lane-dense (multiple of 128)
N_HEADS = 4
HEAD_DIM = D_MODEL // N_HEADS      # 32
HALF = HEAD_DIM // 2               # 16
D_FF = 256                         # lane-dense (multiple of 128)
N_LAYERS = 2
N_VIRTUAL = 5                      # PromptTuningConfig(num_virtual_tokens=5)
EPS = 1e-6
NEG_INF = -1e30
STORE_DTYPE = jnp.bfloat16         # HBM storage dtype (halves DMA bytes)


# ------------------------------ Pallas kernel --------------------------------
def _llm_stack_kernel(x0_ref, bias_ref, cos_ref, sin_ref, rotp_ref,
                      anw_ref, wqkv_ref, wo_ref, mnw_ref, wgu_ref, wd_ref,
                      fnw_ref, out_ref, x_sc, *, t_pad, t_real, batch):
    """One grid step = one transformer layer (attn + MLP) for the whole batch.

    The f32 residual stream stays resident in VMEM scratch across the layer
    grid axis; per-layer bf16 weights stream in via BlockSpec pipelining.
    """
    l = pl.program_id(0)

    @pl.when(l == 0)
    def _():
        x_sc[...] = x0_ref[...].astype(jnp.float32)

    x = x_sc[...]                               # (BT, D) f32 residual stream
    bias = bias_ref[...]                        # (BT, BT) block-diag causal bias
    cos = cos_ref[...]                          # (BT, D) f32
    sin = sin_ref[...]                          # (BT, D) f32
    rotp = rotp_ref[...]                        # (D, D) bf16 rotate-half matrix

    # ---------------- attention block: RMSNorm -> QKV -> RoPE -> attn -> wo ----------------
    var = jnp.mean(x * x, axis=-1, keepdims=True)
    h = (x * jax.lax.rsqrt(var + EPS)
         * anw_ref[0].astype(jnp.float32)).astype(jnp.bfloat16)
    qkv = jnp.dot(h, wqkv_ref[0], preferred_element_type=jnp.float32)   # (BT, 3D)
    q = qkv[:, :D_MODEL]
    k = qkv[:, D_MODEL:2 * D_MODEL]
    v = qkv[:, 2 * D_MODEL:]

    def rope_all(u):
        # Lane-dense rotate-half for all heads at once: rotate_half(u) = u @ rotp.
        r = jnp.dot(u.astype(jnp.bfloat16), rotp,
                    preferred_element_type=jnp.float32)
        return u * cos + r * sin

    q = rope_all(q)
    k = rope_all(k)

    wo = wo_ref[0]                              # (D, D) bf16, rows head-major
    attn_out = jnp.zeros((batch * t_pad, D_MODEL), jnp.float32)
    for hd in range(N_HEADS):                   # static unroll, H=4
        sl = slice(hd * HEAD_DIM, (hd + 1) * HEAD_DIM)
        qh = q[:, sl].astype(jnp.bfloat16)      # scale already folded into wq
        kh = k[:, sl].astype(jnp.bfloat16)
        vh = v[:, sl].astype(jnp.bfloat16)
        s = jax.lax.dot_general(qh, kh, (((1,), (1,)), ((), ())),
                                preferred_element_type=jnp.float32) + bias
        m = jnp.max(s, axis=-1, keepdims=True)
        p = jnp.exp(s - m)
        p = p / jnp.sum(p, axis=-1, keepdims=True)
        head = jnp.dot(p.astype(jnp.bfloat16), vh,
                       preferred_element_type=jnp.float32)              # (BT, Dh)
        # Per-head out-projection accumulation (no 32-lane concat of heads).
        attn_out = attn_out + jnp.dot(head.astype(jnp.bfloat16), wo[sl, :],
                                      preferred_element_type=jnp.float32)
    x = x + attn_out

    # ---------------- MLP block: RMSNorm -> gate/up -> SwiGLU -> down ----------------
    var2 = jnp.mean(x * x, axis=-1, keepdims=True)
    h2 = (x * jax.lax.rsqrt(var2 + EPS)
          * mnw_ref[0].astype(jnp.float32)).astype(jnp.bfloat16)
    gu = jnp.dot(h2, wgu_ref[0], preferred_element_type=jnp.float32)    # (BT, 2F)
    g = gu[:, :D_FF]
    u = gu[:, D_FF:]
    act = (g * jax.nn.sigmoid(g) * u).astype(jnp.bfloat16)              # SwiGLU
    x = x + jnp.dot(act, wd_ref[0], preferred_element_type=jnp.float32)

    x_sc[...] = x

    # ---- fused final model RMSNorm on the last REAL token (last layer only) ----
    @pl.when(l == N_LAYERS - 1)
    def _():
        varf = jnp.mean(x * x, axis=-1, keepdims=True)
        normed = x * jax.lax.rsqrt(varf + EPS) * fnw_ref[...].astype(jnp.float32)
        rows = jnp.concatenate(
            [normed[b * t_pad + t_real - 1: b * t_pad + t_real, :]
             for b in range(batch)], axis=0)
        out_ref[...] = rows.astype(out_ref.dtype)


# ------------------------------ kernel wrapper --------------------------------
def llm_stack(x0, bias, cos, sin, rotp, params, *, t_pad, t_real, batch):
    bt = batch * t_pad
    d = D_MODEL
    kernel = functools.partial(_llm_stack_kernel,
                               t_pad=t_pad, t_real=t_real, batch=batch)
    const2 = lambda l: (0, 0)
    layer3 = lambda l: (l, 0, 0)
    return pl.pallas_call(
        kernel,
        out_shape=jax.ShapeDtypeStruct((batch, d), jnp.float32),
        grid=(N_LAYERS,),
        in_specs=[
            pl.BlockSpec((bt, d), const2),                 # x0 (embeddings, bf16)
            pl.BlockSpec((bt, bt), const2),                # block-diag causal bias
            pl.BlockSpec((bt, d), const2),                 # cos
            pl.BlockSpec((bt, d), const2),                 # sin
            pl.BlockSpec((d, d), const2),                  # rotate-half matrix
            pl.BlockSpec((1, 1, d), layer3),               # attn RMSNorm weight
            pl.BlockSpec((1, d, 3 * d), layer3),           # fused wqkv
            pl.BlockSpec((1, d, d), layer3),               # wo (head-major rows)
            pl.BlockSpec((1, 1, d), layer3),               # mlp RMSNorm weight
            pl.BlockSpec((1, d, 2 * D_FF), layer3),        # fused gate|up
            pl.BlockSpec((1, D_FF, d), layer3),            # down proj
            pl.BlockSpec((1, d), const2),                  # final RMSNorm weight
        ],
        out_specs=pl.BlockSpec((batch, d), const2),
        scratch_shapes=[pltpu.VMEM((bt, d), jnp.float32)],
        compiler_params=pltpu.CompilerParams(
            dimension_semantics=("arbitrary",)),
    )(x0, bias, cos, sin, rotp,
      params["attn_norm"], params["wqkv"], params["wo"],
      params["mlp_norm"], params["wgu"], params["wd"],
      params["final_norm"])


# --------------------------------- JAX glue ----------------------------------
def causal_block_bias(batch, t_pad):
    """Additive bias: 0 where (same batch element AND causal), else -1e30."""
    n = batch * t_pad
    idx = jnp.arange(n)
    same = (idx[:, None] // t_pad) == (idx[None, :] // t_pad)
    causal = idx[None, :] <= idx[:, None]
    return jnp.where(same & causal, 0.0, NEG_INF).astype(jnp.float32)


def rope_tables(batch, t_pad):
    """Lane-dense (B*T, D_MODEL) cos/sin tables (per-head pattern repeated)."""
    lane = jnp.arange(D_MODEL)
    inv_freq = 1.0 / (10000.0 ** (jnp.arange(HALF, dtype=jnp.float32) / HALF))
    lane_freq = inv_freq[lane % HALF]                        # (D,)
    pos = jnp.arange(t_pad, dtype=jnp.float32)
    angles = pos[:, None] * lane_freq[None, :]               # (T, D)
    cos = jnp.tile(jnp.cos(angles), (batch, 1)).astype(jnp.float32)
    sin = jnp.tile(jnp.sin(angles), (batch, 1)).astype(jnp.float32)
    return cos, sin


def rope_rotation_matrix():
    """(D, D) matrix P with rotate_half(u) == u @ P (per-head rotate-half)."""
    i = jnp.arange(D_MODEL)
    j_in_head = i % HEAD_DIM
    src = jnp.where(j_in_head < HALF, i + HALF, i - HALF)    # source lane per output lane
    sign = jnp.where(j_in_head < HALF, -1.0, 1.0)
    p = jnp.zeros((D_MODEL, D_MODEL), jnp.float32)
    p = p.at[src, i].set(sign)
    return p.astype(STORE_DTYPE)


def init_params(key):
    def normal(k, shape, scale=0.02):
        return (scale * jax.random.normal(k, shape, dtype=jnp.float32)).astype(STORE_DTYPE)

    keys = jax.random.split(key, 6)
    # Fused q|k|v with the 1/sqrt(HEAD_DIM) attention scale folded into wq.
    wqkv = 0.02 * jax.random.normal(keys[2], (N_LAYERS, D_MODEL, 3 * D_MODEL),
                                    dtype=jnp.float32)
    wqkv = wqkv.at[:, :, :D_MODEL].multiply(1.0 / (float(HEAD_DIM) ** 0.5))
    return {
        "embed": normal(keys[0], (VOCAB, D_MODEL)),
        "prompt": normal(keys[1], (N_VIRTUAL, D_MODEL)),     # prompt-tuning virtual tokens
        "attn_norm": jnp.ones((N_LAYERS, 1, D_MODEL), STORE_DTYPE),
        "mlp_norm": jnp.ones((N_LAYERS, 1, D_MODEL), STORE_DTYPE),
        "final_norm": jnp.ones((1, D_MODEL), STORE_DTYPE),
        "wqkv": wqkv.astype(STORE_DTYPE),
        "wo": normal(keys[3], (N_LAYERS, D_MODEL, D_MODEL)),
        "wgu": normal(keys[4], (N_LAYERS, D_MODEL, 2 * D_FF)),   # fused gate|up
        "wd": normal(keys[5], (N_LAYERS, D_FF, D_MODEL)),
    }


@jax.jit
def llm_forward(params, token_ids):
    """Returns hidden_states[-1][:, -1, :]  — (B, D_MODEL)."""
    B, S = token_ids.shape
    t_real = S + N_VIRTUAL
    t_pad = ((t_real + 7) // 8) * 8      # (8,128)-aligned activation tiles

    # Embedding lookup + prepend prompt-tuning virtual tokens (PEFT semantics).
    x_tok = params["embed"][token_ids].astype(jnp.float32)              # (B, S, D)
    prompt = jnp.broadcast_to(params["prompt"][None].astype(jnp.float32),
                              (B, N_VIRTUAL, D_MODEL))
    x = jnp.concatenate([prompt, x_tok], axis=1)                        # (B, T_real, D)
    if t_pad > t_real:
        # Tail padding is causally masked out and never read back.
        x = jnp.pad(x, ((0, 0), (0, t_pad - t_real), (0, 0)))
    x = x.reshape(B * t_pad, D_MODEL).astype(STORE_DTYPE)               # (BT, D)

    bias = causal_block_bias(B, t_pad)
    cos, sin = rope_tables(B, t_pad)
    rotp = rope_rotation_matrix()

    return llm_stack(x, bias, cos, sin, rotp, params,
                     t_pad=t_pad, t_real=t_real, batch=B)               # (B, D)


if __name__ == "__main__":
    key = jax.random.PRNGKey(0)
    pkey, tkey = jax.random.split(key)
    params = init_params(pkey)

    # Deterministic synthetic "token ids" standing in for the tokenizer output.
    batch, seq = 2, 8
    token_ids = jax.random.randint(tkey, (batch, seq), 0, VOCAB, dtype=jnp.int32)

    out = llm_forward(params, token_ids)
    out = jax.block_until_ready(out)
    assert out.shape == (batch, D_MODEL), out.shape
    assert bool(jnp.all(jnp.isfinite(out)))
    print("KERNEL_OK")
</pallas_src>

<mosaic_0001>
module attributes {stable_mosaic.version = 11 : i64} {
  func.func @_llm_stack_kernel(%arg0: i32, %arg1: memref<32x128xbf16, #tpu.memory_space<vmem>>, %arg2: memref<32x32xf32, #tpu.memory_space<vmem>>, %arg3: memref<32x128xf32, #tpu.memory_space<vmem>>, %arg4: memref<32x128xf32, #tpu.memory_space<vmem>>, %arg5: memref<128x128xbf16, #tpu.memory_space<vmem>>, %arg6: memref<1x1x128xbf16, #tpu.memory_space<vmem>>, %arg7: memref<1x128x384xbf16, #tpu.memory_space<vmem>>, %arg8: memref<1x128x128xbf16, #tpu.memory_space<vmem>>, %arg9: memref<1x1x128xbf16, #tpu.memory_space<vmem>>, %arg10: memref<1x128x512xbf16, #tpu.memory_space<vmem>>, %arg11: memref<1x256x128xbf16, #tpu.memory_space<vmem>>, %arg12: memref<1x128xbf16, #tpu.memory_space<vmem>>, %arg13: memref<2x128xf32, #tpu.memory_space<vmem>>, %arg14: memref<32x128xf32, #tpu.memory_space<vmem>>) attributes {dimension_semantics = [#tpu.dimension_semantics<arbitrary>], iteration_bounds = array<i64: 2>, scalar_prefetch = 0 : i64, scratch_operands = 1 : i64, tpu.core_type = #tpu.core_type<tc>, window_params = [{pipeline_mode = #tpu.pipeline_mode<synchronous>, transform_indices = @transform_0, window_bounds = array<i64: 32, 128>}, {pipeline_mode = #tpu.pipeline_mode<synchronous>, transform_indices = @transform_1, window_bounds = array<i64: 32, 32>}, {pipeline_mode = #tpu.pipeline_mode<synchronous>, transform_indices = @transform_2, window_bounds = array<i64: 32, 128>}, {pipeline_mode = #tpu.pipeline_mode<synchronous>, transform_indices = @transform_3, window_bounds = array<i64: 32, 128>}, {pipeline_mode = #tpu.pipeline_mode<synchronous>, transform_indices = @transform_4, window_bounds = array<i64: 128, 128>}, {transform_indices = @transform_5, window_bounds = array<i64: 1, 1, 128>}, {transform_indices = @transform_6, window_bounds = array<i64: 1, 128, 384>}, {transform_indices = @transform_7, window_bounds = array<i64: 1, 128, 128>}, {transform_indices = @transform_8, window_bounds = array<i64: 1, 1, 128>}, {transform_indices = @transform_9, window_bounds = array<i64: 1, 128, 512>}, {transform_indices = @transform_10, window_bounds = array<i64: 1, 256, 128>}, {pipeline_mode = #tpu.pipeline_mode<synchronous>, transform_indices = @transform_11, window_bounds = array<i64: 1, 128>}, {pipeline_mode = #tpu.pipeline_mode<synchronous>, transform_indices = @transform_12, window_bounds = array<i64: 2, 128>}]} {
    %c0_i32 = arith.constant 0 : i32
    %0 = arith.cmpi eq, %arg0, %c0_i32 : i32
    %1 = arith.extui %0 : i1 to i32
    %c0_i32_0 = arith.constant 0 : i32
    %2 = arith.cmpi ne, %1, %c0_i32_0 : i32
    scf.if %2 {
      %c0_63 = arith.constant 0 : index
      %c0_64 = arith.constant 0 : index
      %173 = vector.load %arg1[%c0_63, %c0_64] : memref<32x128xbf16, #tpu.memory_space<vmem>>, vector<32x128xbf16>
      %174 = arith.extf %173 : vector<32x128xbf16> to vector<32x128xf32>
      %c0_65 = arith.constant 0 : index
      %c0_66 = arith.constant 0 : index
      %175 = vector.load %arg14[%c0_65, %c0_66] : memref<32x128xf32, #tpu.memory_space<vmem>>, vector<32x128xf32>
      tpu.vector_store %arg14[%c0_65, %c0_66], %174 {strides = array<i32>} : memref<32x128xf32, #tpu.memory_space<vmem>>, vector<32x128xf32>,
    } else {
    }
    %c0 = arith.constant 0 : index
    %c0_1 = arith.constant 0 : index
    %3 = vector.load %arg14[%c0, %c0_1] : memref<32x128xf32, #tpu.memory_space<vmem>>, vector<32x128xf32>
    %c0_2 = arith.constant 0 : index
    %c0_3 = arith.constant 0 : index
    %4 = vector.load %arg2[%c0_2, %c0_3] : memref<32x32xf32, #tpu.memory_space<vmem>>, vector<32x32xf32>
    %c0_4 = arith.constant 0 : index
    %c0_5 = arith.constant 0 : index
    %5 = vector.load %arg3[%c0_4, %c0_5] : memref<32x128xf32, #tpu.memory_space<vmem>>, vector<32x128xf32>
    %c0_6 = arith.constant 0 : index
    %c0_7 = arith.constant 0 : index
    %6 = vector.load %arg4[%c0_6, %c0_7] : memref<32x128xf32, #tpu.memory_space<vmem>>, vector<32x128xf32>
    %c0_8 = arith.constant 0 : index
    %c0_9 = arith.constant 0 : index
    %7 = vector.load %arg5[%c0_8, %c0_9] : memref<128x128xbf16, #tpu.memory_space<vmem>>, vector<128x128xbf16>
    %8 = arith.mulf %3, %3 : vector<32x128xf32>
    %cst = arith.constant dense<0.000000e+00> : vector<32xf32>
    %9 = vector.multi_reduction <add>, %8, %cst [1] : vector<32x128xf32> to vector<32xf32>
    %10 = vector.shape_cast %9 : vector<32xf32> to vector<32x1xf32>
    %cst_10 = arith.constant 1.280000e+02 : f32
    %11 = vector.broadcast %cst_10 : f32 to vector<32x1xf32>
    %12 = arith.divf %10, %11 : vector<32x1xf32>
    %cst_11 = arith.constant 9.99999997E-7 : f32
    %13 = vector.broadcast %cst_11 : f32 to vector<32x1xf32>
    %14 = arith.addf %12, %13 : vector<32x1xf32>
    %15 = math.rsqrt %14 : vector<32x1xf32>
    %16 = vector.broadcast %15 : vector<32x1xf32> to vector<32x128xf32>
    %17 = arith.mulf %3, %16 : vector<32x128xf32>
    %c0_12 = arith.constant 0 : index
    %c0_13 = arith.constant 0 : index
    %c0_14 = arith.constant 0 : index
    %18 = vector.load %arg6[%c0_12, %c0_13, %c0_14] : memref<1x1x128xbf16, #tpu.memory_space<vmem>>, vector<1x1x128xbf16>
    %19 = vector.shape_cast %18 : vector<1x1x128xbf16> to vector<1x128xbf16>
    %20 = arith.extf %19 : vector<1x128xbf16> to vector<1x128xf32>
    %21 = vector.broadcast %20 : vector<1x128xf32> to vector<32x128xf32>
    %22 = arith.mulf %17, %21 : vector<32x128xf32>
    %23 = arith.truncf %22 : vector<32x128xf32> to vector<32x128xbf16>
    %c0_15 = arith.constant 0 : index
    %c0_16 = arith.constant 0 : index
    %c0_17 = arith.constant 0 : index
    %24 = vector.load %arg7[%c0_15, %c0_16, %c0_17] : memref<1x128x384xbf16, #tpu.memory_space<vmem>>, vector<1x128x384xbf16>
    %25 = vector.shape_cast %24 : vector<1x128x384xbf16> to vector<128x384xbf16>
    %cst_18 = arith.constant dense<0.000000e+00> : vector<32x384xf32>
    %26 = tpu.matmul %23, %25, %cst_18 {dimension_numbers = #tpu.dot_dimension_numbers<[1], [0], [0], [1], [0, 0, 1, 1], [], []>} : vector<32x128xbf16>, vector<128x384xbf16>, vector<32x384xf32> -> vector<32x384xf32>
    %27 = vector.extract_strided_slice %26 {offsets = [0, 0], sizes = [32, 128], strides = [1, 1]} : vector<32x384xf32> to vector<32x128xf32>
    %28 = vector.extract_strided_slice %26 {offsets = [0, 128], sizes = [32, 128], strides = [1, 1]} : vector<32x384xf32> to vector<32x128xf32>
    %29 = vector.extract_strided_slice %26 {offsets = [0, 256], sizes = [32, 128], strides = [1, 1]} : vector<32x384xf32> to vector<32x128xf32>
    %30 = arith.truncf %27 : vector<32x128xf32> to vector<32x128xbf16>
    %cst_19 = arith.constant dense<0.000000e+00> : vector<32x128xf32>
    %31 = tpu.matmul %30, %7, %cst_19 {dimension_numbers = #tpu.dot_dimension_numbers<[1], [0], [0], [1], [0, 0, 1, 1], [], []>} : vector<32x128xbf16>, vector<128x128xbf16>, vector<32x128xf32> -> vector<32x128xf32>
    %32 = arith.mulf %27, %5 : vector<32x128xf32>
    %33 = arith.mulf %31, %6 : vector<32x128xf32>
    %34 = arith.addf %32, %33 : vector<32x128xf32>
    %35 = arith.truncf %28 : vector<32x128xf32> to vector<32x128xbf16>
    %cst_20 = arith.constant dense<0.000000e+00> : vector<32x128xf32>
    %36 = tpu.matmul %35, %7, %cst_20 {dimension_numbers = #tpu.dot_dimension_numbers<[1], [0], [0], [1], [0, 0, 1, 1], [], []>} : vector<32x128xbf16>, vector<128x128xbf16>, vector<32x128xf32> -> vector<32x128xf32>
    %37 = arith.mulf %28, %5 : vector<32x128xf32>
    %38 = arith.mulf %36, %6 : vector<32x128xf32>
    %39 = arith.addf %37, %38 : vector<32x128xf32>
    %c0_21 = arith.constant 0 : index
    %c0_22 = arith.constant 0 : index
    %c0_23 = arith.constant 0 : index
    %40 = vector.load %arg8[%c0_21, %c0_22, %c0_23] : memref<1x128x128xbf16, #tpu.memory_space<vmem>>, vector<1x128x128xbf16>
    %41 = vector.shape_cast %40 : vector<1x128x128xbf16> to vector<128x128xbf16>
    %cst_24 = arith.constant 0.000000e+00 : f32
    %42 = vector.broadcast %cst_24 : f32 to vector<32x128xf32>
    %43 = vector.extract_strided_slice %34 {offsets = [0, 0], sizes = [32, 32], strides = [1, 1]} : vector<32x128xf32> to vector<32x32xf32>
    %44 = arith.truncf %43 : vector<32x32xf32> to vector<32x32xbf16>
    %45 = vector.extract_strided_slice %39 {offsets = [0, 0], sizes = [32, 32], strides = [1, 1]} : vector<32x128xf32> to vector<32x32xf32>
    %46 = arith.truncf %45 : vector<32x32xf32> to vector<32x32xbf16>
    %47 = vector.extract_strided_slice %29 {offsets = [0, 0], sizes = [32, 32], strides = [1, 1]} : vector<32x128xf32> to vector<32x32xf32>
    %48 = arith.truncf %47 : vector<32x32xf32> to vector<32x32xbf16>
    %cst_25 = arith.constant dense<0.000000e+00> : vector<32x32xf32>
    %49 = tpu.matmul %44, %46, %cst_25 {dimension_numbers = #tpu.dot_dimension_numbers<[1], [1], [0], [0], [0, 0, 1, 0], [], []>} : vector<32x32xbf16>, vector<32x32xbf16>, vector<32x32xf32> -> vector<32x32xf32>
    %50 = arith.addf %49, %4 : vector<32x32xf32>
    %cst_26 = arith.constant dense<0xFF800000> : vector<32xf32>
    %51 = vector.multi_reduction <maximumf>, %50, %cst_26 [1] : vector<32x32xf32> to vector<32xf32>
    %52 = vector.shape_cast %51 : vector<32xf32> to vector<32x1xf32>
    %53 = vector.broadcast %52 : vector<32x1xf32> to vector<32x32xf32>
    %54 = arith.subf %50, %53 : vector<32x32xf32>
    %55 = math.exp %54 : vector<32x32xf32>
    %cst_27 = arith.constant dense<0.000000e+00> : vector<32xf32>
    %56 = vector.multi_reduction <add>, %55, %cst_27 [1] : vector<32x32xf32> to vector<32xf32>
    %57 = vector.shape_cast %56 : vector<32xf32> to vector<32x1xf32>
    %58 = vector.broadcast %57 : vector<32x1xf32> to vector<32x32xf32>
    %59 = arith.divf %55, %58 : vector<32x32xf32>
    %60 = arith.truncf %59 : vector<32x32xf32> to vector<32x32xbf16>
    %cst_28 = arith.constant dense<0.000000e+00> : vector<32x32xf32>
    %61 = tpu.matmul %60, %48, %cst_28 {dimension_numbers = #tpu.dot_dimension_numbers<[1], [0], [0], [1], [0, 0, 1, 1], [], []>} : vector<32x32xbf16>, vector<32x32xbf16>, vector<32x32xf32> -> vector<32x32xf32>
    %62 = arith.truncf %61 : vector<32x32xf32> to vector<32x32xbf16>
    %63 = vector.extract_strided_slice %41 {offsets = [0, 0], sizes = [32, 128], strides = [1, 1]} : vector<128x128xbf16> to vector<32x128xbf16>
    %cst_29 = arith.constant dense<0.000000e+00> : vector<32x128xf32>
    %64 = tpu.matmul %62, %63, %cst_29 {dimension_numbers = #tpu.dot_dimension_numbers<[1], [0], [0], [1], [0, 0, 1, 1], [], []>} : vector<32x32xbf16>, vector<32x128xbf16>, vector<32x128xf32> -> vector<32x128xf32>
    %65 = arith.addf %42, %64 : vector<32x128xf32>
    %66 = vector.extract_strided_slice %34 {offsets = [0, 32], sizes = [32, 32], strides = [1, 1]} : vector<32x128xf32> to vector<32x32xf32>
    %67 = arith.truncf %66 : vector<32x32xf32> to vector<32x32xbf16>
    %68 = vector.extract_strided_slice %39 {offsets = [0, 32], sizes = [32, 32], strides = [1, 1]} : vector<32x128xf32> to vector<32x32xf32>
    %69 = arith.truncf %68 : vector<32x32xf32> to vector<32x32xbf16>
    %70 = vector.extract_strided_slice %29 {offsets = [0, 32], sizes = [32, 32], strides = [1, 1]} : vector<32x128xf32> to vector<32x32xf32>
    %71 = arith.truncf %70 : vector<32x32xf32> to vector<32x32xbf16>
    %cst_30 = arith.constant dense<0.000000e+00> : vector<32x32xf32>
    %72 = tpu.matmul %67, %69, %cst_30 {dimension_numbers = #tpu.dot_dimension_numbers<[1], [1], [0], [0], [0, 0, 1, 0], [], []>} : vector<32x32xbf16>, vector<32x32xbf16>, vector<32x32xf32> -> vector<32x32xf32>
    %73 = arith.addf %72, %4 : vector<32x32xf32>
    %cst_31 = arith.constant dense<0xFF800000> : vector<32xf32>
    %74 = vector.multi_reduction <maximumf>, %73, %cst_31 [1] : vector<32x32xf32> to vector<32xf32>
    %75 = vector.shape_cast %74 : vector<32xf32> to vector<32x1xf32>
    %76 = vector.broadcast %75 : vector<32x1xf32> to vector<32x32xf32>
    %77 = arith.subf %73, %76 : vector<32x32xf32>
    %78 = math.exp %77 : vector<32x32xf32>
    %cst_32 = arith.constant dense<0.000000e+00> : vector<32xf32>
    %79 = vector.multi_reduction <add>, %78, %cst_32 [1] : vector<32x32xf32> to vector<32xf32>
    %80 = vector.shape_cast %79 : vector<32xf32> to vector<32x1xf32>
    %81 = vector.broadcast %80 : vector<32x1xf32> to vector<32x32xf32>
    %82 = arith.divf %78, %81 : vector<32x32xf32>
    %83 = arith.truncf %82 : vector<32x32xf32> to vector<32x32xbf16>
    %cst_33 = arith.constant dense<0.000000e+00> : vector<32x32xf32>
    %84 = tpu.matmul %83, %71, %cst_33 {dimension_numbers = #tpu.dot_dimension_numbers<[1], [0], [0], [1], [0, 0, 1, 1], [], []>} : vector<32x32xbf16>, vector<32x32xbf16>, vector<32x32xf32> -> vector<32x32xf32>
    %85 = arith.truncf %84 : vector<32x32xf32> to vector<32x32xbf16>
    %86 = vector.extract_strided_slice %41 {offsets = [32, 0], sizes = [32, 128], strides = [1, 1]} : vector<128x128xbf16> to vector<32x128xbf16>
    %cst_34 = arith.constant dense<0.000000e+00> : vector<32x128xf32>
    %87 = tpu.matmul %85, %86, %cst_34 {dimension_numbers = #tpu.dot_dimension_numbers<[1], [0], [0], [1], [0, 0, 1, 1], [], []>} : vector<32x32xbf16>, vector<32x128xbf16>, vector<32x128xf32> -> vector<32x128xf32>
    %88 = arith.addf %65, %87 : vector<32x128xf32>
    %89 = vector.extract_strided_slice %34 {offsets = [0, 64], sizes = [32, 32], strides = [1, 1]} : vector<32x128xf32> to vector<32x32xf32>
    %90 = arith.truncf %89 : vector<32x32xf32> to vector<32x32xbf16>
    %91 = vector.extract_strided_slice %39 {offsets = [0, 64], sizes = [32, 32], strides = [1, 1]} : vector<32x128xf32> to vector<32x32xf32>
    %92 = arith.truncf %91 : vector<32x32xf32> to vector<32x32xbf16>
    %93 = vector.extract_strided_slice %29 {offsets = [0, 64], sizes = [32, 32], strides = [1, 1]} : vector<32x128xf32> to vector<32x32xf32>
    %94 = arith.truncf %93 : vector<32x32xf32> to vector<32x32xbf16>
    %cst_35 = arith.constant dense<0.000000e+00> : vector<32x32xf32>
    %95 = tpu.matmul %90, %92, %cst_35 {dimension_numbers = #tpu.dot_dimension_numbers<[1], [1], [0], [0], [0, 0, 1, 0], [], []>} : vector<32x32xbf16>, vector<32x32xbf16>, vector<32x32xf32> -> vector<32x32xf32>
    %96 = arith.addf %95, %4 : vector<32x32xf32>
    %cst_36 = arith.constant dense<0xFF800000> : vector<32xf32>
    %97 = vector.multi_reduction <maximumf>, %96, %cst_36 [1] : vector<32x32xf32> to vector<32xf32>
    %98 = vector.shape_cast %97 : vector<32xf32> to vector<32x1xf32>
    %99 = vector.broadcast %98 : vector<32x1xf32> to vector<32x32xf32>
    %100 = arith.subf %96, %99 : vector<32x32xf32>
    %101 = math.exp %100 : vector<32x32xf32>
    %cst_37 = arith.constant dense<0.000000e+00> : vector<32xf32>
    %102 = vector.multi_reduction <add>, %101, %cst_37 [1] : vector<32x32xf32> to vector<32xf32>
    %103 = vector.shape_cast %102 : vector<32xf32> to vector<32x1xf32>
    %104 = vector.broadcast %103 : vector<32x1xf32> to vector<32x32xf32>
    %105 = arith.divf %101, %104 : vector<32x32xf32>
    %106 = arith.truncf %105 : vector<32x32xf32> to vector<32x32xbf16>
    %cst_38 = arith.constant dense<0.000000e+00> : vector<32x32xf32>
    %107 = tpu.matmul %106, %94, %cst_38 {dimension_numbers = #tpu.dot_dimension_numbers<[1], [0], [0], [1], [0, 0, 1, 1], [], []>} : vector<32x32xbf16>, vector<32x32xbf16>, vector<32x32xf32> -> vector<32x32xf32>
    %108 = arith.truncf %107 : vector<32x32xf32> to vector<32x32xbf16>
    %109 = vector.extract_strided_slice %41 {offsets = [64, 0], sizes = [32, 128], strides = [1, 1]} : vector<128x128xbf16> to vector<32x128xbf16>
    %cst_39 = arith.constant dense<0.000000e+00> : vector<32x128xf32>
    %110 = tpu.matmul %108, %109, %cst_39 {dimension_numbers = #tpu.dot_dimension_numbers<[1], [0], [0], [1], [0, 0, 1, 1], [], []>} : vector<32x32xbf16>, vector<32x128xbf16>, vector<32x128xf32> -> vector<32x128xf32>
    %111 = arith.addf %88, %110 : vector<32x128xf32>
    %112 = vector.extract_strided_slice %34 {offsets = [0, 96], sizes = [32, 32], strides = [1, 1]} : vector<32x128xf32> to vector<32x32xf32>
    %113 = arith.truncf %112 : vector<32x32xf32> to vector<32x32xbf16>
    %114 = vector.extract_strided_slice %39 {offsets = [0, 96], sizes = [32, 32], strides = [1, 1]} : vector<32x128xf32> to vector<32x32xf32>
    %115 = arith.truncf %114 : vector<32x32xf32> to vector<32x32xbf16>
    %116 = vector.extract_strided_slice %29 {offsets = [0, 96], sizes = [32, 32], strides = [1, 1]} : vector<32x128xf32> to vector<32x32xf32>
    %117 = arith.truncf %116 : vector<32x32xf32> to vector<32x32xbf16>
    %cst_40 = arith.constant dense<0.000000e+00> : vector<32x32xf32>
    %118 = tpu.matmul %113, %115, %cst_40 {dimension_numbers = #tpu.dot_dimension_numbers<[1], [1], [0], [0], [0, 0, 1, 0], [], []>} : vector<32x32xbf16>, vector<32x32xbf16>, vector<32x32xf32> -> vector<32x32xf32>
    %119 = arith.addf %118, %4 : vector<32x32xf32>
    %cst_41 = arith.constant dense<0xFF800000> : vector<32xf32>
    %120 = vector.multi_reduction <maximumf>, %119, %cst_41 [1] : vector<32x32xf32> to vector<32xf32>
    %121 = vector.shape_cast %120 : vector<32xf32> to vector<32x1xf32>
    %122 = vector.broadcast %121 : vector<32x1xf32> to vector<32x32xf32>
    %123 = arith.subf %119, %122 : vector<32x32xf32>
    %124 = math.exp %123 : vector<32x32xf32>
    %cst_42 = arith.constant dense<0.000000e+00> : vector<32xf32>
    %125 = vector.multi_reduction <add>, %124, %cst_42 [1] : vector<32x32xf32> to vector<32xf32>
    %126 = vector.shape_cast %125 : vector<32xf32> to vector<32x1xf32>
    %127 = vector.broadcast %126 : vector<32x1xf32> to vector<32x32xf32>
    %128 = arith.divf %124, %127 : vector<32x32xf32>
    %129 = arith.truncf %128 : vector<32x32xf32> to vector<32x32xbf16>
    %cst_43 = arith.constant dense<0.000000e+00> : vector<32x32xf32>
    %130 = tpu.matmul %129, %117, %cst_43 {dimension_numbers = #tpu.dot_dimension_numbers<[1], [0], [0], [1], [0, 0, 1, 1], [], []>} : vector<32x32xbf16>, vector<32x32xbf16>, vector<32x32xf32> -> vector<32x32xf32>
    %131 = arith.truncf %130 : vector<32x32xf32> to vector<32x32xbf16>
    %132 = vector.extract_strided_slice %41 {offsets = [96, 0], sizes = [32, 128], strides = [1, 1]} : vector<128x128xbf16> to vector<32x128xbf16>
    %cst_44 = arith.constant dense<0.000000e+00> : vector<32x128xf32>
    %133 = tpu.matmul %131, %132, %cst_44 {dimension_numbers = #tpu.dot_dimension_numbers<[1], [0], [0], [1], [0, 0, 1, 1], [], []>} : vector<32x32xbf16>, vector<32x128xbf16>, vector<32x128xf32> -> vector<32x128xf32>
    %134 = arith.addf %111, %133 : vector<32x128xf32>
    %135 = arith.addf %3, %134 : vector<32x128xf32>
    %136 = arith.mulf %135, %135 : vector<32x128xf32>
    %cst_45 = arith.constant dense<0.000000e+00> : vector<32xf32>
    %137 = vector.multi_reduction <add>, %136, %cst_45 [1] : vector<32x128xf32> to vector<32xf32>
    %138 = vector.shape_cast %137 : vector<32xf32> to vector<32x1xf32>
    %cst_46 = arith.constant 1.280000e+02 : f32
    %139 = vector.broadcast %cst_46 : f32 to vector<32x1xf32>
    %140 = arith.divf %138, %139 : vector<32x1xf32>
    %cst_47 = arith.constant 9.99999997E-7 : f32
    %141 = vector.broadcast %cst_47 : f32 to vector<32x1xf32>
    %142 = arith.addf %140, %141 : vector<32x1xf32>
    %143 = math.rsqrt %142 : vector<32x1xf32>
    %144 = vector.broadcast %143 : vector<32x1xf32> to vector<32x128xf32>
    %145 = arith.mulf %135, %144 : vector<32x128xf32>
    %c0_48 = arith.constant 0 : index
    %c0_49 = arith.constant 0 : index
    %c0_50 = arith.constant 0 : index
    %146 = vector.load %arg9[%c0_48, %c0_49, %c0_50] : memref<1x1x128xbf16, #tpu.memory_space<vmem>>, vector<1x1x128xbf16>
    %147 = vector.shape_cast %146 : vector<1x1x128xbf16> to vector<1x128xbf16>
    %148 = arith.extf %147 : vector<1x128xbf16> to vector<1x128xf32>
    %149 = vector.broadcast %148 : vector<1x128xf32> to vector<32x128xf32>
    %150 = arith.mulf %145, %149 : vector<32x128xf32>
    %151 = arith.truncf %150 : vector<32x128xf32> to vector<32x128xbf16>
    %c0_51 = arith.constant 0 : index
    %c0_52 = arith.constant 0 : index
    %c0_53 = arith.constant 0 : index
    %152 = vector.load %arg10[%c0_51, %c0_52, %c0_53] : memref<1x128x512xbf16, #tpu.memory_space<vmem>>, vector<1x128x512xbf16>
    %153 = vector.shape_cast %152 : vector<1x128x512xbf16> to vector<128x512xbf16>
    %cst_54 = arith.constant dense<0.000000e+00> : vector<32x512xf32>
    %154 = tpu.matmul %151, %153, %cst_54 {dimension_numbers = #tpu.dot_dimension_numbers<[1], [0], [0], [1], [0, 0, 1, 1], [], []>} : vector<32x128xbf16>, vector<128x512xbf16>, vector<32x512xf32> -> vector<32x512xf32>
    %155 = vector.extract_strided_slice %154 {offsets = [0, 0], sizes = [32, 256], strides = [1, 1]} : vector<32x512xf32> to vector<32x256xf32>
    %156 = vector.extract_strided_slice %154 {offsets = [0, 256], sizes = [32, 256], strides = [1, 1]} : vector<32x512xf32> to vector<32x256xf32>
    %157 = arith.negf %155 : vector<32x256xf32>
    %158 = math.exp %157 : vector<32x256xf32>
    %cst_55 = arith.constant 1.000000e+00 : f32
    %159 = vector.broadcast %cst_55 : f32 to vector<32x256xf32>
    %160 = arith.addf %159, %158 : vector<32x256xf32>
    %161 = arith.divf %159, %160 : vector<32x256xf32>
    %162 = arith.mulf %155, %161 : vector<32x256xf32>
    %163 = arith.mulf %162, %156 : vector<32x256xf32>
    %164 = arith.truncf %163 : vector<32x256xf32> to vector<32x256xbf16>
    %c0_56 = arith.constant 0 : index
    %c0_57 = arith.constant 0 : index
    %c0_58 = arith.constant 0 : index
    %165 = vector.load %arg11[%c0_56, %c0_57, %c0_58] : memref<1x256x128xbf16, #tpu.memory_space<vmem>>, vector<1x256x128xbf16>
    %166 = vector.shape_cast %165 : vector<1x256x128xbf16> to vector<256x128xbf16>
    %cst_59 = arith.constant dense<0.000000e+00> : vector<32x128xf32>
    %167 = tpu.matmul %164, %166, %cst_59 {dimension_numbers = #tpu.dot_dimension_numbers<[1], [0], [0], [1], [0, 0, 1, 1], [], []>} : vector<32x256xbf16>, vector<256x128xbf16>, vector<32x128xf32> -> vector<32x128xf32>
    %168 = arith.addf %135, %167 : vector<32x128xf32>
    %c0_60 = arith.constant 0 : index
    %c0_61 = arith.constant 0 : index
    %169 = vector.load %arg14[%c0_60, %c0_61] : memref<32x128xf32, #tpu.memory_space<vmem>>, vector<32x128xf32>
    tpu.vector_store %arg14[%c0_60, %c0_61], %168 {strides = array<i32>} : memref<32x128xf32, #tpu.memory_space<vmem>>, vector<32x128xf32>,
    %c1_i32 = arith.constant 1 : i32
    %170 = arith.cmpi eq, %arg0, %c1_i32 : i32
    %171 = arith.extui %170 : i1 to i32
    %c0_i32_62 = arith.constant 0 : i32
    %172 = arith.cmpi ne, %171, %c0_i32_62 : i32
    scf.if %172 {
      %173 = arith.mulf %168, %168 : vector<32x128xf32>
      %cst_63 = arith.constant dense<0.000000e+00> : vector<32xf32>
      %174 = vector.multi_reduction <add>, %173, %cst_63 [1] : vector<32x128xf32> to vector<32xf32>
      %175 = vector.shape_cast %174 : vector<32xf32> to vector<32x1xf32>
      %cst_64 = arith.constant 1.280000e+02 : f32
      %176 = vector.broadcast %cst_64 : f32 to vector<32x1xf32>
      %177 = arith.divf %175, %176 : vector<32x1xf32>
      %cst_65 = arith.constant 9.99999997E-7 : f32
      %178 = vector.broadcast %cst_65 : f32 to vector<32x1xf32>
      %179 = arith.addf %177, %178 : vector<32x1xf32>
      %180 = math.rsqrt %179 : vector<32x1xf32>
      %181 = vector.broadcast %180 : vector<32x1xf32> to vector<32x128xf32>
      %182 = arith.mulf %168, %181 : vector<32x128xf32>
      %c0_66 = arith.constant 0 : index
      %c0_67 = arith.constant 0 : index
      %183 = vector.load %arg12[%c0_66, %c0_67] : memref<1x128xbf16, #tpu.memory_space<vmem>>, vector<1x128xbf16>
      %184 = arith.extf %183 : vector<1x128xbf16> to vector<1x128xf32>
      %185 = vector.broadcast %184 : vector<1x128xf32> to vector<32x128xf32>
      %186 = arith.mulf %182, %185 : vector<32x128xf32>
      %187 = vector.extract_strided_slice %186 {offsets = [12, 0], sizes = [1, 128], strides = [1, 1]} : vector<32x128xf32> to vector<1x128xf32>
      %188 = vector.extract_strided_slice %186 {offsets = [28, 0], sizes = [1, 128], strides = [1, 1]} : vector<32x128xf32> to vector<1x128xf32>
      %189 = tpu.concatenate %187, %188 in 0 : vector<1x128xf32>, vector<1x128xf32> -> vector<2x128xf32>
      %c0_68 = arith.constant 0 : index
      %c0_69 = arith.constant 0 : index
      %190 = vector.load %arg13[%c0_68, %c0_69] : memref<2x128xf32, #tpu.memory_space<vmem>>, vector<2x128xf32>
      tpu.vector_store %arg13[%c0_68, %c0_69], %189 {strides = array<i32>} : memref<2x128xf32, #tpu.memory_space<vmem>>, vector<2x128xf32>,
    } else {
    }
    return
  }
  func.func @transform_0(%arg0: i32) -> (i32, i32) {
    %c0_i32 = arith.constant 0 : i32
    %c0_i32_0 = arith.constant 0 : i32
    %c0_i32_1 = arith.constant 0 : i32
    return %c0_i32, %c0_i32_0 : i32, i32
  }
  func.func @transform_1(%arg0: i32) -> (i32, i32) {
    %c0_i32 = arith.constant 0 : i32
    %c0_i32_0 = arith.constant 0 : i32
    %c0_i32_1 = arith.constant 0 : i32
    return %c0_i32, %c0_i32_0 : i32, i32
  }
  func.func @transform_2(%arg0: i32) -> (i32, i32) {
    %c0_i32 = arith.constant 0 : i32
    %c0_i32_0 = arith.constant 0 : i32
    %c0_i32_1 = arith.constant 0 : i32
    return %c0_i32, %c0_i32_0 : i32, i32
  }
  func.func @transform_3(%arg0: i32) -> (i32, i32) {
    %c0_i32 = arith.constant 0 : i32
    %c0_i32_0 = arith.constant 0 : i32
    %c0_i32_1 = arith.constant 0 : i32
    return %c0_i32, %c0_i32_0 : i32, i32
  }
  func.func @transform_4(%arg0: i32) -> (i32, i32) {
    %c0_i32 = arith.constant 0 : i32
    %c0_i32_0 = arith.constant 0 : i32
    %c0_i32_1 = arith.constant 0 : i32
    return %c0_i32, %c0_i32_0 : i32, i32
  }
  func.func @transform_5(%arg0: i32) -> (i32, i32, i32) {
    %c0_i32 = arith.constant 0 : i32
    %c0_i32_0 = arith.constant 0 : i32
    %c0_i32_1 = arith.constant 0 : i32
    return %arg0, %c0_i32, %c0_i32_0 : i32, i32, i32
  }
  func.func @transform_6(%arg0: i32) -> (i32, i32, i32) {
    %c0_i32 = arith.constant 0 : i32
    %c0_i32_0 = arith.constant 0 : i32
    %c0_i32_1 = arith.constant 0 : i32
    return %arg0, %c0_i32, %c0_i32_0 : i32, i32, i32
  }
  func.func @transform_7(%arg0: i32) -> (i32, i32, i32) {
    %c0_i32 = arith.constant 0 : i32
    %c0_i32_0 = arith.constant 0 : i32
    %c0_i32_1 = arith.constant 0 : i32
    return %arg0, %c0_i32, %c0_i32_0 : i32, i32, i32
  }
  func.func @transform_8(%arg0: i32) -> (i32, i32, i32) {
    %c0_i32 = arith.constant 0 : i32
    %c0_i32_0 = arith.constant 0 : i32
    %c0_i32_1 = arith.constant 0 : i32
    return %arg0, %c0_i32, %c0_i32_0 : i32, i32, i32
  }
  func.func @transform_9(%arg0: i32) -> (i32, i32, i32) {
    %c0_i32 = arith.constant 0 : i32
    %c0_i32_0 = arith.constant 0 : i32
    %c0_i32_1 = arith.constant 0 : i32
    return %arg0, %c0_i32, %c0_i32_0 : i32, i32, i32
  }
  func.func @transform_10(%arg0: i32) -> (i32, i32, i32) {
    %c0_i32 = arith.constant 0 : i32
    %c0_i32_0 = arith.constant 0 : i32
    %c0_i32_1 = arith.constant 0 : i32
    return %arg0, %c0_i32, %c0_i32_0 : i32, i32, i32
  }
  func.func @transform_11(%arg0: i32) -> (i32, i32) {
    %c0_i32 = arith.constant 0 : i32
    %c0_i32_0 = arith.constant 0 : i32
    %c0_i32_1 = arith.constant 0 : i32
    return %c0_i32, %c0_i32_0 : i32, i32
  }
  func.func @transform_12(%arg0: i32) -> (i32, i32) {
    %c0_i32 = arith.constant 0 : i32
    %c0_i32_0 = arith.constant 0 : i32
    %c0_i32_1 = arith.constant 0 : i32
    return %c0_i32, %c0_i32_0 : i32, i32
  }
}

</mosaic_0001>

<bundles_post_ra>
// kernel: llm_forward.1
= control target key start
LH: loop header
LB: loop body
LE: loop exit
PB: predicated region body
PF: predicated region fallthrough
CT: control target
= control target key end

     0   :  { %s4020_s0 = inlined_call_operand.vmem [shape: bf16[32,128], index: 0, kind: input, shape index: {}]   ;;  %s4021_s1 = inlined_call_operand.vmem [shape: f32[32,32], index: 1, kind: input, shape index: {}]   ;;  %s4022_s2 = inlined_call_operand.vmem [shape: f32[32,128], index: 2, kind: input, shape index: {}]   ;;  %s4023_s3 = inlined_call_operand.vmem [shape: f32[32,128], index: 3, kind: input, shape index: {}]   ;;  %s4024_s4 = inlined_call_operand.vmem [shape: bf16[128,128], index: 4, kind: input, shape index: {}]   ;;  %s4025_s5 = inlined_call_operand.vmem [shape: bf16[2,1,128], index: 5, kind: input, shape index: {}]   ;;  %s4026_s6 = inlined_call_operand.vmem [shape: bf16[2,128,384], index: 6, kind: input, shape index: {}]   ;;  %s4027_s7 = inlined_call_operand.vmem [shape: bf16[2,128,128], index: 7, kind: input, shape index: {}]   ;;  %s4028_s8 = inlined_call_operand.vmem [shape: bf16[2,1,128], index: 8, kind: input, shape index: {}]   ;;  %s4029_s9 = inlined_call_operand.vmem [shape: bf16[2,128,512], index: 9, kind: input, shape index: {}]   ;;  %s4030_s10 = inlined_call_operand.vmem [shape: bf16[2,256,128], index: 10, kind: input, shape index: {}]   ;;  %s4031_s11 = inlined_call_operand.vmem [shape: bf16[1,128], index: 11, kind: input, shape index: {}]   ;;  %s4032_s12 = inlined_call_operand.hbm [shape: f32[2,128], index: 12, kind: output, shape index: {}]  }
   0x1   :  { %4035 = sst [smem:[#allocation7_spill]] %s4032_s12 }
   0x2   :  { %17 = vsyncpa [#allocation4], 0  ;;  %s3538_s21 = smov 0  }
   0x3 LB: > { %4036 = sst [smem:[#allocation6_spill]] %s3466_s21  ;;  %s3544_s22 = sadd.s32 4294967295, %s3466_s21   ;;  %s3466_s21 = sphi %s3538_s21, %s23_s21  }
   0x4   : > { %p2750_p0 = scmp.ge.s32.totalorder %s3466_s21, 1  ;;  %p404_p1 = scmp.lt.s32.totalorder %s3466_s21, 3 }
   0x6   : > { %p405_p2 = pnand %p2750_p0, %p404_p1 }
   0x7   : > { %p462_p3 = scmp.lt.s32.totalorder (!%p405_p2), %s3544_s22, 1  ;;  %p2758_p4 = scmp.ne.s32.totalorder (!%p405_p2), %s3544_s22, 0 }
   0x8   : > { %408 = sbr.rel (%p405_p2) target bundleno = 3138 (0xc42), region = 68 }
   0xf   : > { %s3550_s23 = scalar_select %p462_p3, %s3544_s22, 1 }
  0x10   : > { %492 = sbr.rel (%p2758_p4) target bundleno = 23 (0x17), region = 72  ;;  %v2888_v0 = vld [vmem:[%s4020_s0] sm:$0xff] (!%p2758_p4)   ;;  %v2895_v1 = vld [vmem:[%s4020_s0 + $0x8] sm:$0xff] (!%p2758_p4)  }
  0x11   : > { %s3178_s27 = smul.u32 192, %s3550_s23  ;;  %s2884_s28 = sshll.u32 %s3550_s23, 6  ;;  %v2889_v2 = vunpack.c.l.bf16 (!%p2758_p4), %v2888_v0  ;;  %v2890_v3 = vunpack.c.h.bf16 (!%p2758_p4), %v2888_v0  ;;  %v2893_v4 = vunpack.c.l.bf16 (!%p2758_p4), %v2895_v1  ;;  %v2894_v5 = vunpack.c.h.bf16 (!%p2758_p4), %v2895_v1 }
  0x12   : > { %s477_s13 = scalar_lea.vmem %s4028_s8, %s3550_s23  ;;  %s3570_s19 = scalar_lea.vmem %s4027_s7, %s2884_s28 }
  0x13   : > { %s3565_s16 = scalar_lea.vmem %s4026_s6, %s3178_s27  ;;  %s2885_s20 = sshll.u32 %s3550_s23, 8  ;;  %501 = vst [vmem:[#allocation2] sm:$0xff] (!%p2758_p4), %v2889_v2  ;;  %502 = vst [vmem:[#allocation2 + $0x8] sm:$0xff] (!%p2758_p4), %v2890_v3 }
  0x14   : > { %s2886_s24 = sshll.u32 %s3550_s23, 7  ;;  %s3577_s21 = scalar_lea.vmem %s4029_s9, %s2885_s20  ;;  %503 = vst [vmem:[#allocation2 + $0x10] sm:$0xff] (!%p2758_p4), %v2893_v4  ;;  %504 = vst [vmem:[#allocation2 + $0x18] sm:$0xff] (!%p2758_p4), %v2894_v5 }
  0x15   : > { %s3582_s30 = scalar_lea.vmem %s4030_s10, %s2886_s24 }
  0x17 PF: > { %v3198_v12 = vld [vmem:[%s3565_s16 + $0x4] ss:$12 sps:$4 sm:$0xff]   ;;  %v3200_v13 = vld [vmem:[%s3565_s16] ss:$12 sps:$4 sm:$0xff]   ;;  %v3201_v16 = vld [vmem:[%s3565_s16 + $0x8] ss:$12 sps:$4 sm:$0xff]   ;;  %v568_v50 = vlaneseq  ;;  %s4037_s18 = scalar_lea.vmem %s4025_s5, %s3550_s23 }
  0x18   : > { %738 = vmatprep.subr.bf16.mxu0 %v3198_v12  ;;  %v3202_v17 = vld [vmem:[%s3565_s16 + $0x1c] ss:$12 sps:$4 sm:$0xff]   ;;  %v3204_v18 = vld [vmem:[%s3565_s16 + $0x18] ss:$12 sps:$4 sm:$0xff]   ;;  %3002 = vmatprep.subr.bf16.mxu1 %v3201_v16  ;;  %v3205_v19 = vld [vmem:[%s3565_s16 + $0x20] ss:$12 sps:$4 sm:$0xff]  }
  0x19   : > { %739 = vmatpush1.bf16.msra.mxu0 %v3200_v13  ;;  %3003 = vmatpush3.bf16.msra.mxu1 %v3201_v16  ;;  %v3206_v20 = vld [vmem:[%s3565_s16 + $0x34] ss:$12 sps:$4 sm:$0xff]   ;;  %v3208_v21 = vld [vmem:[%s3565_s16 + $0x30] ss:$12 sps:$4 sm:$0xff]   ;;  %v3209_v22 = vld [vmem:[%s3565_s16 + $0x38] ss:$12 sps:$4 sm:$0xff]  }
  0x1a   : > { %v3591_v6 = vld [vmem:[#allocation2] sm:$0xff]  ;;  %v3595_v8 = vld [vmem:[#allocation2 + $0x8] sm:$0xff]  ;;  %740 = vmatprep.subr.bf16.mxu0 %v3202_v17  ;;  %3004 = vmatprep.subr.bf16.mxu1 %v3205_v19  ;;  %v3213_v25 = vld [vmem:[%s3565_s16 + $0x50] ss:$12 sps:$4 sm:$0xff]   ;;  %v3468_v36 = vmov 0   ;;  %v569_v53 = vshrl.u32 %v568_v50, 7 }
  0x1b   : > { %v3593_v7 = vld [vmem:[#allocation2 + $0x10] sm:$0xff]  ;;  %v537_v9 = vmul.f32 %v3591_v6, %v3591_v6  ;;  %v3601_v11 = vld [vmem:[#allocation2 + $0x18] sm:$0xff]  ;;  %v538_v14 = vmul.f32 %v3595_v8, %v3595_v8  ;;  %v3216_v27 = vld [vmem:[%s3565_s16 + $0x60] ss:$12 sps:$4 sm:$0xff]   ;;  %770 = vmatprep.mubr.bf16.mxu0 %v3468_v36  ;;  %vm1036_vm0 = vcmask 261120   ;;  %s3469_s27 = smov 96  }
  0x1c   : > { %v539_v10 = vmul.f32 %v3593_v7, %v3593_v7  ;;  %v540_v15 = vmul.f32 %v3601_v11, %v3601_v11  ;;  %v3210_v23 = vld [vmem:[%s3565_s16 + $0x4c] ss:$12 sps:$4 sm:$0xff]   ;;  %v3212_v24 = vld [vmem:[%s3565_s16 + $0x48] ss:$12 sps:$4 sm:$0xff]   ;;  %v3214_v26 = vld [vmem:[%s3565_s16 + $0x64] ss:$12 sps:$4 sm:$0xff]  }
  0x1d   : > { %541 = vadd.xlane.f32.xlu0 %v537_v9  ;;  %741 = vmatpush1.bf16.msra.mxu0 %v3204_v18  ;;  %v3217_v28 = vld [vmem:[%s3565_s16 + $0x68] ss:$12 sps:$4 sm:$0xff]   ;;  %v3221_v30 = vld [vmem:[%s3565_s16 + $0x80] ss:$12 sps:$4 sm:$0xff]   ;;  %v3220_v31 = vld [vmem:[%s3565_s16 + $0x78] ss:$12 sps:$4 sm:$0xff]  }
  0x1e   : > { %545 = vadd.xlane.f32.xlu1 %v539_v10  ;;  %3005 = vmatpush3.bf16.msra.mxu1 %v3205_v19  ;;  %v3218_v29 = vld [vmem:[%s3565_s16 + $0x7c] ss:$12 sps:$4 sm:$0xff]   ;;  %v3222_v32 = vld [vmem:[%s3565_s16 + $0x94] ss:$12 sps:$4 sm:$0xff]   ;;  %v3225_v34 = vld [vmem:[%s3565_s16 + $0x98] ss:$12 sps:$4 sm:$0xff]  }
  0x1f   : > { %742 = vmatprep.subr.bf16.mxu0 %v3206_v20  ;;  %3006 = vmatprep.subr.bf16.mxu1 %v3209_v22  ;;  %v3224_v33 = vld [vmem:[%s3565_s16 + $0x90] ss:$12 sps:$4 sm:$0xff]   ;;  %v3226_v35 = vld [vmem:[%s3565_s16 + $0xac] ss:$12 sps:$4 sm:$0xff]   ;;  %v3228_v38 = vld [vmem:[%s3565_s16 + $0xa8] ss:$12 sps:$4 sm:$0xff]  }
  0x20   : > { %v3229_v37 = vld [vmem:[%s3565_s16 + $0xb0] ss:$12 sps:$4 sm:$0xff]   ;;  %v3230_v39 = vld [vmem:[%s4024_s4] sm:$0xff]   ;;  %v3640_v56 = vsub.s32 0, %v569_v53  ;;  %v3235_v12 = vld [vmem:[%s4024_s4 + $0x28] sm:$0xff]   ;;  %s3470_s14 = smov 64  }
  0x21   : > { %543 = vadd.xlane.f32.xlu0 %v538_v14  ;;  %743 = vmatpush1.bf16.msra.mxu0 %v3208_v21  ;;  %v566_v54 = vld [vmem:[%s4037_s18] sm:$0x1]  ;;  %v3236_v13 = vld [vmem:[%s4024_s4 + $0x30] sm:$0xff]   ;;  %v3237_v14 = vld [vmem:[%s4024_s4 + $0x38] sm:$0xff]   ;;  %s3471_s24 = smov 32   ;;  %p2879_p5 = scmp.ne.s32.totalorder %s3544_s22, 1 }
  0x22   : > { %547 = vadd.xlane.f32.xlu1 %v540_v15  ;;  %3007 = vmatpush3.bf16.msra.mxu1 %v3209_v22  ;;  %v567_v55 = vunpack.c.l.bf16 %v566_v54  ;;  %vm2644_vm1 = vcmask (!%p2879_p5), 1040384  }
  0x23   : > { %744 = vmatprep.subr.bf16.mxu0 %v3210_v23  ;;  %3008 = vmatprep.subr.bf16.mxu1 %v3213_v25 }
  0x24   : > { %v571_v61 = vrot.slane %v567_v55, %v3640_v56 }
  0x25   : > { %745 = vmatpush1.bf16.msra.mxu0 %v3212_v24 }
  0x26   : > { %3009 = vmatpush3.bf16.msra.mxu1 %v3213_v25  ;;  %746 = vmatprep.subr.bf16.mxu0 %v3214_v26 }
  0x27   : > { %3010 = vmatprep.subr.bf16.mxu1 %v3217_v28 }
  0x29   : > { %747 = vmatpush1.bf16.msra.mxu0 %v3216_v27 }
  0x2a   : > { %3011 = vmatpush3.bf16.msra.mxu1 %v3217_v28  ;;  %748 = vmatprep.subr.bf16.mxu0 %v3218_v29 }
  0x2b   : > { %3012 = vmatprep.subr.bf16.mxu1 %v3221_v30 }
  0x2d   : > { %749 = vmatpush1.bf16.msra.mxu0 %v3220_v31 }
  0x2e   : > { %3013 = vmatpush3.bf16.msra.mxu1 %v3221_v30  ;;  %750 = vmatprep.subr.bf16.mxu0 %v3222_v32 }
  0x2f   : > { %3014 = vmatprep.subr.bf16.mxu1 %v3225_v34 }
  0x31   : > { %751 = vmatpush1.bf16.msra.mxu0 %v3224_v33  ;;  %v513_v33 = vld [vmem:[%s4022_s2] sm:$0xff] }
  0x32   : > { %3015 = vmatpush3.bf16.msra.mxu1 %v3225_v34  ;;  %752 = vmatprep.subr.bf16.mxu0 %v3226_v35  ;;  %v514_v34 = vld [vmem:[%s4022_s2 + $0x8] sm:$0xff]  ;;  %v515_v35 = vld [vmem:[%s4022_s2 + $0x10] sm:$0xff] }
  0x33   : > { %3016 = vmatprep.subr.bf16.mxu1 %v3229_v37 }
  0x35   : > { %753 = vmatpush1.bf16.msra.mxu0 %v3228_v38  ;;  %v516_v38 = vld [vmem:[%s4022_s2 + $0x18] sm:$0xff] }
  0x36   : > { %3017 = vmatpush3.bf16.msra.mxu1 %v3229_v37  ;;  %3022 = vmatprep.subr.bf16.mxu0 %v3230_v39  ;;  %v519_v37 = vld [vmem:[%s4023_s3 + $0x10] sm:$0xff] }
  0x37   : > { %3042 = vmatprep.subr.bf16.mxu1 %v3230_v39 }
  0xaa   : > { %v542_v40 = vpop.xlane.xlu0 %541 }
  0xab   : > { %v546_v41 = vpop.xlane.xlu1 %545  ;;  %v550_v42 = vmul.f32 0.0078125, %v542_v40 }
  0xac   : > { %v552_v43 = vmul.f32 0.0078125, %v546_v41 }
  0xad   : > { %v554_v44 = vadd.f32 1e-06, %v550_v42  ;;  %v520_v42 = vld [vmem:[%s4023_s3 + $0x18] sm:$0xff] }
  0xae   : > { %v556_v45 = vadd.f32 1e-06, %v552_v43  ;;  %v544_v46 = vpop.xlane.xlu0 %543 }
  0xaf   : > { %v548_v47 = vpop.xlane.xlu1 %547  ;;  %3310 = vrsqrt.f32 %v554_v44  ;;  %v551_v48 = vmul.f32 0.0078125, %v544_v46 }
  0xb0   : > { %v553_v49 = vmul.f32 0.0078125, %v548_v47  ;;  %3312 = vrsqrt.f32 %v556_v45 }
  0xb1   : > { %v555_v51 = vadd.f32 1e-06, %v551_v48 }
  0xb2   : > { %v557_v52 = vadd.f32 1e-06, %v553_v49  ;;  %v518_v49 = vld [vmem:[%s4023_s3 + $0x8] sm:$0xff] }
  0xb3   : > { %3314 = vrsqrt.f32 %v555_v51 }
  0xb4   : > { %3316 = vrsqrt.f32 %v557_v52 }
  0xb9   : > { %v3311_v57 = vpop.eup %3310 }
  0xba   : > { %v3313_v58 = vpop.eup %3312  ;;  %v562_v60 = vmul.f32 %v3311_v57, %v3591_v6  ;;  %v3232_v6 = vld [vmem:[%s4024_s4 + $0x10] sm:$0xff]  }
  0xbb   : > { %v564_v59 = vmul.f32 %v3313_v58, %v3593_v7  ;;  %v3231_v7 = vld [vmem:[%s4024_s4 + $0x8] sm:$0xff]  }
  0xbc   : > { %v572_v3 = vmul.f32 %v571_v61, %v562_v60 }
  0xbd   : > { %v3315_v62 = vpop.eup %3314  ;;  %v574_v2 = vmul.f32 %v571_v61, %v564_v59 }
  0xbe   : > { %v3317_v63 = vpop.eup %3316  ;;  %v563_v0 = vmul.f32 %v3315_v62, %v3595_v8  ;;  %v3233_v8 = vld [vmem:[%s4024_s4 + $0x18] sm:$0xff]  }
  0xbf   : > { %v565_v1 = vmul.f32 %v3317_v63, %v3601_v11  ;;  %v3234_v11 = vld [vmem:[%s4024_s4 + $0x20] sm:$0xff]  }
  0xc0   : > { %v573_v4 = vmul.f32 %v571_v61, %v563_v0 }
  0xc1   : > { %v575_v5 = vmul.f32 %v571_v61, %v565_v1 }
  0xc2   : > { %v576_v9 = vpack.c.bf16 %v573_v4, %v572_v3 }
  0xc3   : > { %v577_v10 = vpack.c.bf16 %v575_v5, %v574_v2 }
  0xc4   : > { %771 = vmatmul.mubr.bf16.vlgmr.msra.gmra.mrb[0].mxu0 %v576_v9  ;;  %3018 = vmatprep.mubr.bf16.mxu1 %v576_v9 }
  0xc5   : > { %3019 = vmatmul.mubr.bf16.vlgmr.msra.gmra.mrb[0].mxu1 %v577_v10  ;;  %780 = vmatprep.mubr.bf16.mxu0 %v3468_v36 }
  0xc6   : > { %3023 = vmatpush3.bf16.msra.mxu0 %v3230_v39  ;;  %3043 = vmatpush3.bf16.msra.mxu1 %v3230_v39  ;;  %v517_v39 = vld [vmem:[%s4023_s3] sm:$0xff] }
  0xc7   : > { %3024 = vmatprep.subr.bf16.mxu0 %v3231_v7  ;;  %3044 = vmatprep.subr.bf16.mxu1 %v3231_v7 }
  0xca   : > { %3025 = vmatpush3.bf16.msra.mxu0 %v3231_v7  ;;  %3045 = vmatpush3.bf16.msra.mxu1 %v3231_v7 }
  0xcb   : > { %3026 = vmatprep.subr.bf16.mxu0 %v3232_v6  ;;  %3046 = vmatprep.subr.bf16.mxu1 %v3232_v6 }
  0xcc   : > { %781 = vmatmul.mubr.bf16.gmra.mrb[4].mxu0 %v577_v10 }
  0xce   : > { %3027 = vmatpush3.bf16.msra.mxu0 %v3232_v6  ;;  %3047 = vmatpush3.bf16.msra.mxu1 %v3232_v6 }
  0xcf   : > { %3028 = vmatprep.subr.bf16.mxu0 %v3233_v8  ;;  %3048 = vmatprep.subr.bf16.mxu1 %v3233_v8 }
  0xd2   : > { %3029 = vmatpush3.bf16.msra.mxu0 %v3233_v8  ;;  %3049 = vmatpush3.bf16.msra.mxu1 %v3233_v8 }
  0xd3   : > { %3030 = vmatprep.subr.bf16.mxu0 %v3234_v11  ;;  %3050 = vmatprep.subr.bf16.mxu1 %v3234_v11 }
  0xd6   : > { %3031 = vmatpush3.bf16.msra.mxu0 %v3234_v11  ;;  %3051 = vmatpush3.bf16.msra.mxu1 %v3234_v11 }
  0xd7   : > { %3032 = vmatprep.subr.bf16.mxu0 %v3235_v12  ;;  %3052 = vmatprep.subr.bf16.mxu1 %v3235_v12 }
  0xda   : > { %3033 = vmatpush3.bf16.msra.mxu0 %v3235_v12  ;;  %3053 = vmatpush3.bf16.msra.mxu1 %v3235_v12 }
  0xdb   : > { %3034 = vmatprep.subr.bf16.mxu0 %v3236_v13  ;;  %3054 = vmatprep.subr.bf16.mxu1 %v3236_v13 }
  0xde   : > { %3035 = vmatpush3.bf16.msra.mxu0 %v3236_v13  ;;  %3055 = vmatpush3.bf16.msra.mxu1 %v3236_v13 }
  0xdf   : > { %3036 = vmatprep.subr.bf16.mxu0 %v3237_v14  ;;  %3056 = vmatprep.subr.bf16.mxu1 %v3237_v14 }
  0xe2   : > { %3037 = vmatpush3.bf16.msra.mxu0 %v3237_v14  ;;  %3057 = vmatpush3.bf16.msra.mxu1 %v3237_v14 }
 0x197   : > { %v772_v15 = vpop.f32.mrb[0].mxu0 }
 0x198   : > { %v774_v16 = vpop.f32.mrb[1].mxu0  ;;  %v3020_v17 = vpop.f32.mrb[0].mxu1  ;;  %v939_v40 = vmul.f32 %v772_v15, %v513_v33 }
 0x199   : > { %v776_v18 = vpop.f32.mrb[2].mxu0  ;;  %v825_v19 = vpop.f32.mrb[1].mxu1  ;;  %v1002_v43 = vmul.f32 %v774_v16, %v513_v33  ;;  %v3757_v33 = vld [vmem:[%s4021_s1 + $0x10] sm:$0xff] }
 0x19a   : > { %v840_v20 = vpack.c.bf16 %v776_v18, %v772_v15  ;;  %v778_v21 = vpop.f32.mrb[3].mxu0  ;;  %v3021_v22 = vpop.f32.mrb[2].mxu1  ;;  %v940_v44 = vmul.f32 %v776_v18, %v514_v34 }
 0x19b   : > { %v951_v23 = vpack.c.bf16 %v778_v21, %v774_v16  ;;  %v3669_v24 = vpack.c.bf16 %v3021_v22, %v3020_v17  ;;  %v828_v25 = vpop.f32.mrb[3].mxu1  ;;  %v1003_v4 = vmul.f32 %v778_v21, %v514_v34 }
 0x19c   : > { %v3671_v26 = vpack.c.bf16 %v828_v25, %v825_v19  ;;  %3038 = vmatprep.mubr.bf16.mxu0 %v840_v20 }
 0x19d   : > { %3058 = vmatprep.mubr.bf16.mxu1 %v951_v23 }
 0x19f   : > { %v782_v27 = vpop.f32.mrb[4].mxu0 }
 0x1a0   : > { %v784_v28 = vpop.f32.mrb[5].mxu0  ;;  %v941_v45 = vmul.f32 %v782_v27, %v515_v35 }
 0x1a1   : > { %v786_v29 = vpop.f32.mrb[6].mxu0  ;;  %v1004_v50 = vmul.f32 %v784_v28, %v515_v35  ;;  %v3762_v35 = vld [vmem:[%s4021_s1 + $0x8] sm:$0xff] }
 0x1a2   : > { %v841_v30 = vpack.c.bf16 %v786_v29, %v782_v27  ;;  %v788_v31 = vpop.f32.mrb[7].mxu0  ;;  %v942_v51 = vmul.f32 %v786_v29, %v516_v38 }
 0x1a3   : > { %v952_v32 = vpack.c.bf16 %v788_v31, %v784_v28  ;;  %v1005_v57 = vmul.f32 %v788_v31, %v516_v38  ;;  %v3752_v31 = vld [vmem:[%s4021_s1] sm:$0xff] }
 0x1a4   : > { %3039 = vmatmul.mubr.bf16.vlgmr.msra.gmra.mrb[8].mxu0 %v841_v30 }
 0x1a5   : > { %3059 = vmatmul.mubr.bf16.vlgmr.msra.gmra.mrb[4].mxu1 %v952_v32 }
 0x277   : > { %v3040_v41 = vpop.f32.mrb[8].mxu0 }
 0x278   : > { %v945_v46 = vmul.f32 %v3040_v41, %v519_v37  ;;  %v924_v47 = vpop.f32.mrb[9].mxu0  ;;  %v3060_v48 = vpop.f32.mrb[4].mxu1 }
 0x279   : > { %v943_v52 = vmul.f32 %v924_v47, %v517_v39  ;;  %v1008_v53 = vmul.f32 %v3060_v48, %v519_v37  ;;  %v3041_v54 = vpop.f32.mrb[10].mxu0  ;;  %v987_v55 = vpop.f32.mrb[5].mxu1 }
 0x27a   : > { %v949_v58 = vadd.f32 %v945_v46, %v941_v45  ;;  %v946_v59 = vmul.f32 %v3041_v54, %v520_v42  ;;  %v1006_v60 = vmul.f32 %v987_v55, %v517_v39  ;;  %v927_v61 = vpop.f32.mrb[11].mxu0  ;;  %v3061_v62 = vpop.f32.mrb[6].mxu1 }
 0x27b   : > { %v947_v63 = vadd.f32 %v943_v52, %v939_v40  ;;  %v1012_v0 = vadd.f32 %v1008_v53, %v1004_v50  ;;  %v944_v1 = vmul.f32 %v927_v61, %v518_v49  ;;  %v1009_v2 = vmul.f32 %v3061_v62, %v520_v42  ;;  %v990_v3 = vpop.f32.mrb[7].mxu1 }
 0x27c   : > { %v950_v5 = vadd.f32 %v946_v59, %v942_v51  ;;  %v1010_v9 = vadd.f32 %v1006_v60, %v1002_v43  ;;  %v1007_v10 = vmul.f32 %v990_v3, %v518_v49  ;;  %v3771_v43 = vld [vmem:[%s4021_s1 + $0x18] sm:$0xff] }
 0x27d   : > { %v948_v7 = vadd.f32 %v944_v1, %v940_v44  ;;  %v1013_v6 = vadd.f32 %v1009_v2, %v1005_v57 }
 0x27e   : > { %v3697_v8 = vpack.c.bf16 %v950_v5, %v949_v58  ;;  %v1011_v11 = vadd.f32 %v1007_v10, %v1003_v4 }
 0x27f   : > { %v3699_v12 = vpack.c.bf16 %v948_v7, %v947_v63  ;;  %v3701_v13 = vpack.c.bf16 %v1013_v6, %v1012_v0 }
 0x280   : > { %v3703_v14 = vpack.c.bf16 %v1011_v11, %v1010_v9 }
 0x281   : > { %1211 = vrot.lane.b32.xlu1 %v3701_v13, %s3469_s27  ;;  %3066 = vmatprep.mubr.msk.bf16.mxu0 %vm1036_vm0, %v3699_v12  ;;  %v1047_v16 = vsel %vm1036_vm0, %v3701_v13, 0 }
 0x282   : > { %1209 = vrot.lane.b32.xlu0 %v3703_v14, %s3469_s27  ;;  %3170 = vmatprep.subr.msk.bf16.mxu0 %vm1036_vm0, %v3703_v14  ;;  %v1044_v15 = vsel %vm1036_vm0, %v3703_v14, 0 }
 0x283   : > { %3063 = vmatpush3.bf16.xpose.msra.mxu0 %v1044_v15 }
 0x284   : > { %3171 = vmatprep.subr.msk.bf16.mxu0 %vm1036_vm0, %v3701_v13 }
 0x285   : > { %1203 = vrot.lane.b32.xlu1 %v3699_v12, %s3469_s27 }
 0x286   : > { %1523 = vrot.lane.b32.xlu0 %v3703_v14, %s3470_s14 }
 0x289   : > { %1205 = vrot.lane.b32.xlu1 %v3697_v8, %s3469_s27 }
 0x28a   : > { %1519 = vrot.lane.b32.xlu0 %v3699_v12, %s3470_s14 }
 0x28b   : > { %3065 = vmatpush3.bf16.xpose.msra.mxu0 %v1047_v16 }
 0x28c   : > { %3070 = vmatprep.subr.bf16.mxu0 %v3671_v26 }
 0x28d   : > { %1525 = vrot.lane.b32.xlu1 %v3701_v13, %s3470_s14 }
 0x291   : > { %1521 = vrot.lane.b32.xlu1 %v3697_v8, %s3470_s14 }
 0x292   : > { %3067 = vmatmul.mubr.msk.bf16.vlgmr.msra.gmra.mrb[12].mxu0 %vm1036_vm0, %v3697_v8 }
 0x293   : > { %3071 = vmatpush3.bf16.msra.mxu0 %v3671_v26 }
 0x294   : > { %3072 = vmatprep.subr.bf16.mxu0 %v3669_v24 }
 0x297   : > { %3073 = vmatpush3.bf16.msra.mxu0 %v3669_v24 }
 0x2f3   : > { %v1212_v17 = vpop.permute.xlu1 %1211 }
 0x2f4   : > { %v1210_v18 = vpop.permute.xlu0 %1209  ;;  %v1223_v21 = vsel %vm1036_vm0, %v1212_v17, 0 }
 0x2f5   : > { %v1220_v19 = vsel %vm1036_vm0, %v1210_v18, 0  ;;  %3172 = vmatprep.subr.msk.bf16.mxu1 %vm1036_vm0, %v1210_v18 }
 0x2f6   : > { %3079 = vmatpush3.bf16.xpose.msra.mxu1 %v1220_v19 }
 0x2f7   : > { %3173 = vmatprep.subr.msk.bf16.mxu1 %vm1036_vm0, %v1212_v17  ;;  %v1204_v20 = vpop.permute.xlu1 %1203 }
 0x2f8   : > { %3082 = vmatprep.mubr.msk.bf16.mxu1 %vm1036_vm0, %v1204_v20  ;;  %v1524_v22 = vpop.permute.xlu0 %1523 }
 0x2f9   : > { %v1534_v25 = vsel %vm1036_vm0, %v1524_v22, 0 }
 0x2fb   : > { %v1206_v23 = vpop.permute.xlu1 %1205 }
 0x2fc   : > { %v1520_v27 = vpop.permute.xlu0 %1519 }
 0x2fe   : > { %3081 = vmatpush3.bf16.xpose.msra.mxu1 %v1223_v21 }
 0x2ff   : > { %3174 = vmatprep.subr.msk.bf16.mxu1 %vm1036_vm0, %v1524_v22  ;;  %v1526_v28 = vpop.permute.xlu1 %1525 }
 0x300   : > { %v1537_v29 = vsel %vm1036_vm0, %v1526_v28, 0 }
 0x303   : > { %v1522_v30 = vpop.permute.xlu1 %1521 }
 0x305   : > { %3083 = vmatmul.mubr.msk.bf16.vlgmr.msra.gmra.mrb[8].mxu1 %vm1036_vm0, %v1206_v23 }
 0x306   : > { %3111 = vmatpush3.bf16.xpose.msra.mxu1 %v1534_v25  ;;  %3114 = vmatprep.mubr.msk.bf16.mxu1 %vm1036_vm0, %v1520_v27 }
 0x307   : > { %3175 = vmatprep.subr.msk.bf16.mxu1 %vm1036_vm0, %v1526_v28 }
 0x30e   : > { %3113 = vmatpush3.bf16.xpose.msra.mxu1 %v1537_v29 }
 0x315   : > { %3115 = vmatmul.mubr.msk.bf16.vlgmr.msra.gmra.mrb[12].mxu1 %vm1036_vm0, %v1522_v30 }
 0x365   : > { %v3068_v32 = vpop.f32.mrb[12].mxu0 }
 0x366   : > { %v1083_v34 = vpop.f32.mrb[13].mxu0  ;;  %v1092_v40 = vadd.f32 %v3068_v32, %v3757_v33 }
 0x367   : > { %v1084_v37 = vadd.f32 %v1083_v34, %v3752_v31  ;;  %v3069_v38 = vpop.f32.mrb[14].mxu0 }
 0x368   : > { %v1086_v39 = vpop.f32.mrb[15].mxu0  ;;  %v1095_v45 = vadd.f32 %v3069_v38, %v3771_v43  ;;  %v1104_v46 = vsel %vm1036_vm0, %v1092_v40, -inf }
 0x369   : > { %v1087_v41 = vadd.f32 %v1086_v39, %v3762_v35  ;;  %v1098_v42 = vsel %vm1036_vm0, %v1084_v37, -inf }
 0x36a   : > { %1099 = vmax.xlane.f32.xlu0 %v1098_v42  ;;  %v1107_v47 = vsel %vm1036_vm0, %v1095_v45, -inf }
 0x36b   : > { %v1101_v44 = vsel %vm1036_vm0, %v1087_v41, -inf }
 0x36c   : > { %1102 = vmax.xlane.f32.xlu1 %v1101_v44 }
 0x36e   : > { %1105 = vmax.xlane.f32.xlu0 %v1104_v46 }
 0x372   : > { %1108 = vmax.xlane.f32.xlu0 %v1107_v47 }
 0x3d8   : > { %v3084_v48 = vpop.f32.mrb[8].mxu1 }
 0x3d9   : > { %v1259_v49 = vpop.f32.mrb[9].mxu1  ;;  %v1268_v53 = vadd.f32 %v3084_v48, %v3757_v33 }
 0x3da   : > { %v1260_v50 = vadd.f32 %v1259_v49, %v3752_v31  ;;  %v3085_v51 = vpop.f32.mrb[10].mxu1 }
 0x3db   : > { %v1262_v52 = vpop.f32.mrb[11].mxu1  ;;  %v1271_v57 = vadd.f32 %v3085_v51, %v3771_v43  ;;  %v1280_v59 = vsel %vm1036_vm0, %v1268_v53, -inf }
 0x3dc   : > { %v1263_v54 = vadd.f32 %v1262_v52, %v3762_v35  ;;  %v1274_v55 = vsel %vm1036_vm0, %v1260_v50, -inf }
 0x3dd   : > { %1275 = vmax.xlane.f32.xlu0 %v1274_v55  ;;  %v1283_v60 = vsel %vm1036_vm0, %v1271_v57, -inf }
 0x3de   : > { %v1277_v58 = vsel %vm1036_vm0, %v1263_v54, -inf }
 0x3df   : > { %1278 = vmax.xlane.f32.xlu1 %v1277_v58 }
 0x3e1   : > { %1281 = vmax.xlane.f32.xlu0 %v1280_v59 }
 0x3e3   : > { %1284 = vmax.xlane.f32.xlu1 %v1283_v60 }
 0x3e8   : > { %v3785_v61 = vpop.f32.mrb[12].mxu1 }
 0x3e9   : > { %v3787_v62 = vpop.f32.mrb[13].mxu1 }
 0x3ea   : > { %v3789_v63 = vpop.f32.mrb[14].mxu1 }
 0x3eb   : > { %v3791_v0 = vpop.f32.mrb[15].mxu1 }
 0x3f7   : > { %v1100_v1 = vpop.xlane.xlu0 %1099 }
 0x3f8   : > { %v1110_v2 = vsub.f32 %v1084_v37, %v1100_v1 }
 0x3f9   : > { %v1103_v3 = vpop.xlane.xlu1 %1102 }
 0x3fa   : > { %v1114_v9 = vmul.f32 1.442695, %v1110_v2  ;;  %v1111_v10 = vsub.f32 %v1087_v41, %v1103_v3 }
 0x3fb   : > { %v1106_v4 = vpop.xlane.xlu0 %1105 }
 0x3fc   : > { %v1112_v5 = vsub.f32 %v1092_v40, %v1106_v4  ;;  %v1116_v15 = vmul.f32 1.442695, %v1111_v10 }
 0x3fe   : > { %v1118_v7 = vmul.f32 1.442695, %v1112_v5 }
 0x3ff   : > { %v1109_v6 = vpop.xlane.xlu0 %1108 }
 0x400   : > { %3318 = vpow2.f32 %v1118_v7  ;;  %v1113_v11 = vsub.f32 %v1095_v45, %v1109_v6  ;;  %v1577_v7 = vadd.f32 %v3791_v0, %v3762_v35 }
 0x401   : > { %3320 = vpow2.f32 %v1114_v9  ;;  %v1585_v9 = vadd.f32 %v3789_v63, %v3771_v43 }
 0x402   : > { %v1120_v16 = vmul.f32 1.442695, %v1113_v11 }
 0x403   : > { %v1597_v6 = vsel %vm1036_vm0, %v1585_v9, -inf }
 0x404   : > { %3322 = vpow2.f32 %v1120_v16 }
 0x405   : > { %3324 = vpow2.f32 %v1116_v15 }
 0x40a   : > { %v3319_v17 = vpop.eup %3318 }
 0x40b   : > { %v1128_v18 = vsel %vm1036_vm0, %v3319_v17, 0.0  ;;  %v3321_v19 = vpop.eup %3320 }
 0x40c   : > { %1129 = vadd.xlane.f32.xlu0 %v1128_v18  ;;  %v1122_v21 = vsel %vm1036_vm0, %v3321_v19, 0.0 }
 0x40e   : > { %v3323_v20 = vpop.eup %3322 }
 0x40f   : > { %v1131_v22 = vsel %vm1036_vm0, %v3323_v20, 0.0  ;;  %v3325_v23 = vpop.eup %3324 }
 0x410   : > { %1123 = vadd.xlane.f32.xlu0 %v1122_v21  ;;  %1132 = vadd.xlane.f32.xlu1 %v1131_v22  ;;  %v1125_v25 = vsel %vm1036_vm0, %v3325_v23, 0.0 }
 0x414   : > { %1126 = vadd.xlane.f32.xlu1 %v1125_v25 }
 0x46a   : > { %v1276_v27 = vpop.xlane.xlu0 %1275 }
 0x46b   : > { %v1286_v28 = vsub.f32 %v1260_v50, %v1276_v27 }
 0x46c   : > { %v1279_v29 = vpop.xlane.xlu1 %1278 }
 0x46d   : > { %v1287_v32 = vsub.f32 %v1263_v54, %v1279_v29  ;;  %v1290_v37 = vmul.f32 1.442695, %v1286_v28 }
 0x46e   : > { %v1282_v30 = vpop.xlane.xlu0 %1281 }
 0x46f   : > { %v1288_v34 = vsub.f32 %v1268_v53, %v1282_v30  ;;  %v1292_v41 = vmul.f32 1.442695, %v1287_v32 }
 0x470   : > { %v1285_v38 = vpop.xlane.xlu1 %1284 }
 0x471   : > { %v1294_v39 = vmul.f32 1.442695, %v1288_v34  ;;  %v1289_v40 = vsub.f32 %v1271_v57, %v1285_v38 }
 0x473   : > { %3326 = vpow2.f32 %v1294_v39  ;;  %v1296_v42 = vmul.f32 1.442695, %v1289_v40 }
 0x474   : > { %3328 = vpow2.f32 %v1290_v37 }
 0x475   : > { %3330 = vpow2.f32 %v1296_v42 }
 0x476   : > { %3332 = vpow2.f32 %v1292_v41 }
 0x47d   : > { %v3797_v44 = vpop.eup %3326 }
 0x47e   : > { %v3799_v45 = vpop.eup %3328  ;;  %v1304_v46 = vsel %vm1036_vm0, %v3797_v44, 0.0 }
 0x47f   : > { %v3803_v47 = vpop.eup %3330  ;;  %1305 = vadd.xlane.f32.xlu0 %v1304_v46  ;;  %v1298_v50 = vsel %vm1036_vm0, %v3799_v45, 0.0 }
 0x480   : > { %v1307_v48 = vsel %vm1036_vm0, %v3803_v47, 0.0  ;;  %v3807_v49 = vpop.eup %3332 }
 0x481   : > { %1308 = vadd.xlane.f32.xlu1 %v1307_v48  ;;  %v1301_v51 = vsel %vm1036_vm0, %v3807_v49, 0.0 }
 0x483   : > { %1299 = vadd.xlane.f32.xlu0 %v1298_v50 }
 0x485   : > { %1302 = vadd.xlane.f32.xlu1 %v1301_v51 }
 0x496   : > { %1324 = vrot.lane.b32.xlu1 %v3669_v24, %s3469_s27 }
 0x499   : > { %1322 = vrot.lane.b32.xlu0 %v3671_v26, %s3469_s27  ;;  %v1130_v52 = vpop.xlane.xlu0 %1129 }
 0x49a   : > { %1772 = vrot.lane.b32.xlu1 %v3703_v14, %s3471_s24 }
 0x49d   : > { %v1133_v53 = vpop.xlane.xlu1 %1132  ;;  %1768 = vrot.lane.b32.xlu0 %v3699_v12, %s3471_s24  ;;  %v1124_v54 = vpop.xlane.xlu0 %1123 }
 0x49e   : > { %1774 = vrot.lane.b32.xlu1 %v3701_v13, %s3471_s24  ;;  %3334 = vrcp.f32 %v1133_v53  ;;  %v1574_v13 = vadd.f32 %v3787_v62, %v3752_v31  ;;  %v1591_v62 = vsel %vm1036_vm0, %v1577_v7, -inf }
 0x49f   : > { %3336 = vrcp.f32 %v1124_v54 }
 0x4a0   : > { %3338 = vrcp.f32 %v1130_v52  ;;  %v1588_v5 = vsel %vm1036_vm0, %v1574_v13, -inf }
 0x4a1   : > { %v1127_v55 = vpop.xlane.xlu1 %1126 }
 0x4a2   : > { %3340 = vrcp.f32 %v1127_v55  ;;  %1770 = vrot.lane.b32.xlu1 %v3697_v8, %s3471_s24  ;;  %v1582_v8 = vadd.f32 %v3785_v61, %v3757_v33 }
 0x4a4   : > { %v1594_v10 = vsel %vm1036_vm0, %v1582_v8, -inf }
 0x4a8   : > { %v3335_v57 = vpop.eup %3334 }
 0x4a9   : > { %v3337_v58 = vpop.eup %3336  ;;  %v1141_v60 = vmul.f32 %v3335_v57, %v3323_v20 }
 0x4aa   : > { %v3339_v59 = vpop.eup %3338  ;;  %v1135_v1 = vmul.f32 %v3337_v58, %v3321_v19 }
 0x4ab   : > { %v1139_v12 = vmul.f32 %v3339_v59, %v3319_v17 }
 0x4ac   : > { %v3341_v14 = vpop.eup %3340 }
 0x4ad   : > { %v1137_v2 = vmul.f32 %v3341_v14, %v3325_v23  ;;  %v1143_v4 = vpack.c.bf16 %v1141_v60, %v1139_v12  ;;  %v3238_v60 = vld [vmem:[%s3570_s19 + $0x10] sm:$0xff]  }
 0x4af   : > { %v1142_v3 = vpack.c.bf16 %v1137_v2, %v1135_v1  ;;  %v3239_v1 = vld [vmem:[%s3570_s19 + $0x18] sm:$0xff]   ;;  %v3240_v2 = vld [vmem:[%s3570_s19] sm:$0xff]  }
 0x4b1   : > { %3074 = vmatprep.mubr.msk.bf16.mxu0 %vm1036_vm0, %v1142_v3 }
 0x4b2   : > { %3075 = vmatmul.mubr.msk.bf16.vlgmr.msra.gmra.mrb[16].mxu0 %vm1036_vm0, %v1143_v4 }
 0x4bc   : > { %1589 = vmax.xlane.f32.xlu0 %v1588_v5 }
 0x4c0   : > { %1595 = vmax.xlane.f32.xlu0 %v1594_v10 }
 0x4c4   : > { %1598 = vmax.xlane.f32.xlu0 %v1597_v6 }
 0x4c6   : > { %1592 = vmax.xlane.f32.xlu1 %v1591_v62 }
 0x50c   : > { %v1306_v11 = vpop.xlane.xlu0 %1305 }
 0x50e   : > { %v1309_v61 = vpop.xlane.xlu1 %1308 }
 0x50f   : > { %3342 = vrcp.f32 %v1309_v61 }
 0x510   : > { %v1300_v15 = vpop.xlane.xlu0 %1299 }
 0x511   : > { %3344 = vrcp.f32 %v1300_v15 }
 0x512   : > { %3346 = vrcp.f32 %v1306_v11  ;;  %v1303_v16 = vpop.xlane.xlu1 %1302 }
 0x513   : > { %3348 = vrcp.f32 %v1303_v16 }
 0x514   : > { %v1323_v63 = vpop.permute.xlu0 %1322 }
 0x515   : > { %3086 = vmatprep.subr.bf16.mxu0 %v1323_v63 }
 0x516   : > { %v1325_v17 = vpop.permute.xlu1 %1324  ;;  %3087 = vmatpush3.bf16.msra.mxu0 %v1323_v63 }
 0x517   : > { %3088 = vmatprep.subr.bf16.mxu0 %v1325_v17 }
 0x518   : > { %v1769_v0 = vpop.permute.xlu0 %1768 }
 0x519   : > { %3138 = vmatprep.mubr.msk.bf16.mxu1 %vm1036_vm0, %v1769_v0  ;;  %v3343_v18 = vpop.eup %3342 }
 0x51a   : > { %v1773_v19 = vpop.permute.xlu1 %1772  ;;  %3089 = vmatpush3.bf16.msra.mxu0 %v1325_v17  ;;  %v1317_v25 = vmul.f32 %v3343_v18, %v3803_v47  ;;  %v3241_v17 = vld [vmem:[%s3570_s19 + $0x8] sm:$0xff]  }
 0x51b   : > { %v3345_v20 = vpop.eup %3344  ;;  %v1783_v21 = vsel %vm1036_vm0, %v1773_v19, 0  ;;  %3176 = vmatprep.subr.msk.bf16.mxu1 %vm1036_vm0, %v1773_v19  ;;  %3094 = vmatprep.subr.bf16.mxu0 %v3238_v60 }
 0x51c   : > { %v3347_v22 = vpop.eup %3346  ;;  %3135 = vmatpush3.bf16.xpose.msra.mxu1 %v1783_v21  ;;  %v1311_v28 = vmul.f32 %v3345_v20, %v3799_v45 }
 0x51d   : > { %v3349_v23 = vpop.eup %3348  ;;  %v1315_v30 = vmul.f32 %v3347_v22, %v3797_v44 }
 0x51e   : > { %v1775_v27 = vpop.permute.xlu1 %1774  ;;  %v1313_v29 = vmul.f32 %v3349_v23, %v3807_v49 }
 0x51f   : > { %3177 = vmatprep.subr.msk.bf16.mxu1 %vm1036_vm0, %v1775_v27  ;;  %v1319_v34 = vpack.c.bf16 %v1317_v25, %v1315_v30  ;;  %v1786_v37 = vsel %vm1036_vm0, %v1775_v27, 0 }
 0x520   : > { %v1318_v32 = vpack.c.bf16 %v1313_v29, %v1311_v28 }
 0x522   : > { %3090 = vmatprep.mubr.msk.bf16.mxu0 %vm1036_vm0, %v1318_v32  ;;  %v1771_v38 = vpop.permute.xlu1 %1770 }
 0x523   : > { %3091 = vmatmul.mubr.msk.bf16.vlgmr.msra.gmra.mrb[20].mxu0 %vm1036_vm0, %v1319_v34 }
 0x524   : > { %3137 = vmatpush3.bf16.xpose.msra.mxu1 %v1786_v37  ;;  %3095 = vmatpush3.bf16.msra.mxu0 %v3238_v60 }
 0x525   : > { %3096 = vmatprep.subr.bf16.mxu0 %v3239_v1 }
 0x528   : > { %3097 = vmatpush3.bf16.msra.mxu0 %v3239_v1 }
 0x529   : > { %3102 = vmatprep.subr.bf16.mxu0 %v3240_v2 }
 0x52b   : > { %3139 = vmatmul.mubr.msk.bf16.vlgmr.msra.gmra.mrb[16].mxu1 %vm1036_vm0, %v1771_v38 }
 0x52c   : > { %2285 = vmatprep.mubr.bf16.mxu1 %v3468_v36 }
 0x549   : > { %v1590_v39 = vpop.xlane.xlu0 %1589 }
 0x54a   : > { %v1600_v40 = vsub.f32 %v1574_v13, %v1590_v39 }
 0x54c   : > { %v1604_v44 = vmul.f32 1.442695, %v1600_v40 }
 0x54d   : > { %v1596_v41 = vpop.xlane.xlu0 %1595 }
 0x54e   : > { %v1602_v42 = vsub.f32 %v1582_v8, %v1596_v41 }
 0x550   : > { %v1608_v45 = vmul.f32 1.442695, %v1602_v42 }
 0x551   : > { %v1599_v46 = vpop.xlane.xlu0 %1598 }
 0x552   : > { %3350 = vpow2.f32 %v1608_v45  ;;  %v1603_v47 = vsub.f32 %v1585_v9, %v1599_v46  ;;  %v3243_v45 = vld [vmem:[%s3570_s19 + $0x28] sm:$0xff]  }
 0x553   : > { %v1593_v48 = vpop.xlane.xlu1 %1592  ;;  %3352 = vpow2.f32 %v1604_v44  ;;  %v3242_v44 = vld [vmem:[%s3570_s19 + $0x20] sm:$0xff]  }
 0x554   : > { %v1610_v49 = vmul.f32 1.442695, %v1603_v47  ;;  %v1601_v50 = vsub.f32 %v1577_v7, %v1593_v48 }
 0x556   : > { %3354 = vpow2.f32 %v1610_v49  ;;  %v1606_v51 = vmul.f32 1.442695, %v1601_v50 }
 0x558   : > { %3356 = vpow2.f32 %v1606_v51 }
 0x55c   : > { %v3852_v52 = vpop.eup %3350 }
 0x55d   : > { %v1618_v53 = vsel %vm1036_vm0, %v3852_v52, 0.0  ;;  %v3856_v54 = vpop.eup %3352 }
 0x55e   : > { %1619 = vadd.xlane.f32.xlu0 %v1618_v53  ;;  %v1612_v57 = vsel %vm1036_vm0, %v3856_v54, 0.0 }
 0x560   : > { %v3858_v55 = vpop.eup %3354 }
 0x561   : > { %v1621_v58 = vsel %vm1036_vm0, %v3858_v55, 0.0 }
 0x562   : > { %v3357_v59 = vpop.eup %3356  ;;  %1613 = vadd.xlane.f32.xlu0 %v1612_v57  ;;  %1622 = vadd.xlane.f32.xlu1 %v1621_v58 }
 0x563   : > { %v1615_v14 = vsel %vm1036_vm0, %v3357_v59, 0.0 }
 0x566   : > { %1616 = vadd.xlane.f32.xlu1 %v1615_v14 }
 0x577   : > { %1636 = vrot.lane.b32.xlu1 %v3669_v24, %s3470_s14 }
 0x578   : > { %1634 = vrot.lane.b32.xlu0 %v3671_v26, %s3470_s14 }
 0x585   : > { %v3076_v12 = vpop.f32.mrb[16].mxu0 }
 0x586   : > { %v1184_v3 = vpop.f32.mrb[17].mxu0 }
 0x587   : > { %v3077_v4 = vpop.f32.mrb[18].mxu0 }
 0x588   : > { %v1200_v13 = vpack.c.bf16 %v3077_v4, %v3076_v12  ;;  %v1187_v8 = vpop.f32.mrb[19].mxu0 }
 0x589   : > { %v1199_v5 = vpack.c.bf16 %v1187_v8, %v1184_v3 }
 0x5eb   : > { %v1620_v10 = vpop.xlane.xlu0 %1619 }
 0x5ef   : > { %v1623_v9 = vpop.xlane.xlu1 %1622  ;;  %v1614_v6 = vpop.xlane.xlu0 %1613 }
 0x5f3   : > { %v1617_v7 = vpop.xlane.xlu1 %1616  ;;  %v1635_v23 = vpop.permute.xlu0 %1634 }
 0x5f4   : > { %3358 = vrcp.f32 %v1617_v7 }
 0x5f5   : > { %3360 = vrcp.f32 %v1614_v6 }
 0x5f6   : > { %v3092_v62 = vpop.f32.mrb[20].mxu0  ;;  %3362 = vrcp.f32 %v1623_v9 }
 0x5f7   : > { %v1368_v11 = vpop.f32.mrb[21].mxu0  ;;  %3364 = vrcp.f32 %v1620_v10 }
 0x5f8   : > { %v3093_v61 = vpop.f32.mrb[22].mxu0 }
 0x5f9   : > { %v1384_v15 = vpack.c.bf16 %v3093_v61, %v3092_v62  ;;  %v1371_v16 = vpop.f32.mrb[23].mxu0 }
 0x5fa   : > { %v1383_v63 = vpack.c.bf16 %v1371_v16, %v1368_v11 }
 0x5fc   : > { %3098 = vmatprep.mubr.msk.bf16.mxu0 %vm1036_vm0, %v1383_v63 }
 0x5fd   : > { %3099 = vmatmul.mubr.msk.bf16.vlgmr.msra.gmra.mrb[24].mxu0 %vm1036_vm0, %v1384_v15  ;;  %v3244_v15 = vld [vmem:[%s3570_s19 + $0x30] sm:$0xff]  }
 0x5fe   : > { %3103 = vmatpush3.bf16.msra.mxu0 %v3240_v2  ;;  %3106 = vmatprep.mubr.msk.bf16.mxu0 %vm1036_vm0, %v1199_v5  ;;  %v3140_v0 = vpop.f32.mrb[16].mxu1  ;;  %v3359_v21 = vpop.eup %3358 }
 0x5ff   : > { %v1822_v18 = vpop.f32.mrb[17].mxu1  ;;  %3104 = vmatprep.subr.bf16.mxu0 %v3241_v17  ;;  %v3361_v29 = vpop.eup %3360  ;;  %v1831_v30 = vadd.f32 %v3140_v0, %v3757_v33  ;;  %v1627_v34 = vmul.f32 %v3359_v21, %v3357_v59 }
 0x600   : > { %v1823_v19 = vadd.f32 %v1822_v18, %v3752_v31  ;;  %v3141_v20 = vpop.f32.mrb[18].mxu1  ;;  %v1625_v37 = vmul.f32 %v3361_v29, %v3856_v54  ;;  %v1637_v33 = vpop.permute.xlu1 %1636 }
 0x601   : > { %v1825_v22 = vpop.f32.mrb[19].mxu1  ;;  %v1834_v25 = vadd.f32 %v3141_v20, %v3771_v43  ;;  %v3363_v43 = vpop.eup %3362 }
 0x602   : > { %3105 = vmatpush3.bf16.msra.mxu0 %v3241_v17  ;;  %v1826_v27 = vadd.f32 %v1825_v22, %v3762_v35  ;;  %v1837_v28 = vsel %vm1036_vm0, %v1823_v19, -inf  ;;  %v1843_v35 = vsel %vm1036_vm0, %v1831_v30, -inf  ;;  %v1632_v38 = vpack.c.bf16 %v1627_v34, %v1625_v37  ;;  %v3365_v39 = vpop.eup %3364  ;;  %v3248_v37 = vld [vmem:[%s3577_s21 + $0x4] ss:$16 sps:$4 sm:$0xff]  }
 0x603   : > { %3118 = vmatprep.subr.bf16.mxu0 %v1635_v23  ;;  %1838 = vmax.xlane.f32.xlu1 %v1837_v28  ;;  %v1846_v31 = vsel %vm1036_vm0, %v1834_v25, -inf  ;;  %v1631_v40 = vmul.f32 %v3363_v43, %v3858_v55  ;;  %v1629_v41 = vmul.f32 %v3365_v39, %v3852_v52  ;;  %v3249_v43 = vld [vmem:[%s3577_s21 + $0x8] ss:$16 sps:$4 sm:$0xff]   ;;  %v3257_v39 = vld [vmem:[%s3577_s21 + $0x2c] ss:$16 sps:$4 sm:$0xff]  }
 0x604   : > { %v1840_v32 = vsel %vm1036_vm0, %v1826_v27, -inf  ;;  %2253 = vmatprep.subr.bf16.mxu1 %v3248_v37 }
 0x605   : > { %1841 = vmax.xlane.f32.xlu0 %v1840_v32  ;;  %v1633_v42 = vpack.c.bf16 %v1631_v40, %v1629_v41  ;;  %v3255_v40 = vld [vmem:[%s3577_s21 + $0x28] ss:$16 sps:$4 sm:$0xff]   ;;  %v3260_v41 = vld [vmem:[%s3577_s21 + $0x44] ss:$16 sps:$4 sm:$0xff]  }
 0x607   : > { %1847 = vmax.xlane.f32.xlu1 %v1846_v31  ;;  %v3246_v31 = vld [vmem:[%s3577_s21] ss:$16 sps:$4 sm:$0xff]  }
 0x608   : > { %2254 = vmatpush1.bf16.msra.mxu1 %v3246_v31 }
 0x609   : > { %3107 = vmatmul.mubr.msk.bf16.vlgmr.msra.gmra.mrb[24].mxu0 %vm1036_vm0, %v1200_v13  ;;  %1844 = vmax.xlane.f32.xlu0 %v1843_v35  ;;  %v3251_v35 = vld [vmem:[%s3577_s21 + $0xc] ss:$16 sps:$4 sm:$0xff]  }
 0x60a   : > { %3119 = vmatpush3.bf16.msra.mxu0 %v1635_v23  ;;  %3122 = vmatprep.mubr.msk.bf16.mxu0 %vm1036_vm0, %v1632_v38  ;;  %v3254_v38 = vld [vmem:[%s3577_s21 + $0x24] ss:$16 sps:$4 sm:$0xff]  }
 0x60b   : > { %3120 = vmatprep.subr.bf16.mxu0 %v1637_v33  ;;  %2255 = vmatprep.subr.bf16.mxu1 %v3254_v38 }
 0x60e   : > { %3121 = vmatpush3.bf16.msra.mxu0 %v1637_v33  ;;  %v3252_v33 = vld [vmem:[%s3577_s21 + $0x20] ss:$16 sps:$4 sm:$0xff]  }
 0x60f   : > { %3126 = vmatprep.subr.bf16.mxu0 %v3242_v44  ;;  %2256 = vmatpush1.bf16.msra.mxu1 %v3252_v33 }
 0x610   : > { %2257 = vmatprep.subr.bf16.mxu1 %v3260_v41 }
 0x611   : > { %3123 = vmatmul.mubr.msk.bf16.vlgmr.msra.gmra.mrb[28].mxu0 %vm1036_vm0, %v1633_v42  ;;  %v3263_v42 = vld [vmem:[%s3577_s21 + $0x4c] ss:$16 sps:$4 sm:$0xff]  }
 0x612   : > { %3127 = vmatpush3.bf16.msra.mxu0 %v3242_v44  ;;  %v3258_v44 = vld [vmem:[%s3577_s21 + $0x40] ss:$16 sps:$4 sm:$0xff]  }
 0x613   : > { %3128 = vmatprep.subr.bf16.mxu0 %v3243_v45  ;;  %2258 = vmatpush1.bf16.msra.mxu1 %v3258_v44 }
 0x616   : > { %3129 = vmatpush3.bf16.msra.mxu0 %v3243_v45  ;;  %v3261_v45 = vld [vmem:[%s3577_s21 + $0x48] ss:$16 sps:$4 sm:$0xff]  }
 0x690   : > { %v1839_v46 = vpop.xlane.xlu1 %1838 }
 0x691   : > { %v1849_v50 = vsub.f32 %v1823_v19, %v1839_v46 }
 0x692   : > { %v1842_v47 = vpop.xlane.xlu0 %1841 }
 0x693   : > { %v1850_v48 = vsub.f32 %v1826_v27, %v1842_v47  ;;  %v1853_v57 = vmul.f32 1.442695, %v1849_v50 }
 0x694   : > { %v1848_v49 = vpop.xlane.xlu1 %1847 }
 0x695   : > { %v1852_v51 = vsub.f32 %v1834_v25, %v1848_v49  ;;  %v1855_v53 = vmul.f32 1.442695, %v1850_v48  ;;  %v3245_v25 = vld [vmem:[%s3570_s19 + $0x38] sm:$0xff]   ;;  %v3422_v48 = vld [vmem:[#allocation2] sm:$0xff] }
 0x696   : > { %v1845_v54 = vpop.xlane.xlu0 %1844 }
 0x697   : > { %v1859_v55 = vmul.f32 1.442695, %v1852_v51  ;;  %v1851_v52 = vsub.f32 %v1831_v30, %v1845_v54 }
 0x699   : > { %3366 = vpow2.f32 %v1859_v55  ;;  %v1857_v58 = vmul.f32 1.442695, %v1851_v52  ;;  %v3424_v55 = vld [vmem:[#allocation2 + $0x8] sm:$0xff] }
 0x69a   : > { %3368 = vpow2.f32 %v1855_v53  ;;  %v3423_v53 = vld [vmem:[#allocation2 + $0x18] sm:$0xff] }
 0x69b   : > { %3370 = vpow2.f32 %v1857_v58  ;;  %v3425_v58 = vld [vmem:[#allocation2 + $0x10] sm:$0xff] }
 0x69c   : > { %3372 = vpow2.f32 %v1853_v57 }
 0x6a3   : > { %v3367_v59 = vpop.eup %3366 }
 0x6a4   : > { %v3369_v14 = vpop.eup %3368  ;;  %v1870_v60 = vsel %vm1036_vm0, %v3367_v59, 0.0 }
 0x6a5   : > { %v3371_v1 = vpop.eup %3370  ;;  %1871 = vadd.xlane.f32.xlu1 %v1870_v60  ;;  %v1864_v3 = vsel %vm1036_vm0, %v3369_v14, 0.0 }
 0x6a6   : > { %v1867_v2 = vsel %vm1036_vm0, %v3371_v1, 0.0  ;;  %v3373_v12 = vpop.eup %3372 }
 0x6a7   : > { %1868 = vadd.xlane.f32.xlu0 %v1867_v2  ;;  %v1861_v4 = vsel %vm1036_vm0, %v3373_v12, 0.0  ;;  %v3266_v2 = vld [vmem:[%s3577_s21 + $0x64] ss:$16 sps:$4 sm:$0xff]  }
 0x6a8   : > { %2259 = vmatprep.subr.bf16.mxu1 %v3266_v2  ;;  %v3304_v2 = vld [vmem:[%s3582_s30 + $0x68] sm:$0xff]  }
 0x6a9   : > { %1865 = vadd.xlane.f32.xlu1 %v1864_v3  ;;  %v3264_v3 = vld [vmem:[%s3577_s21 + $0x60] ss:$16 sps:$4 sm:$0xff]  }
 0x6aa   : > { %2260 = vmatpush1.bf16.msra.mxu1 %v3264_v3  ;;  %v3306_v3 = vld [vmem:[%s3582_s30 + $0x70] sm:$0xff]  }
 0x6ab   : > { %1862 = vadd.xlane.f32.xlu0 %v1861_v4  ;;  %v3267_v4 = vld [vmem:[%s3577_s21 + $0x68] ss:$16 sps:$4 sm:$0xff]  }
 0x6ba   : > { %1885 = vrot.lane.b32.xlu1 %v3669_v24, %s3471_s24 }
 0x6c1   : > { %1883 = vrot.lane.b32.xlu0 %v3671_v26, %s3471_s24 }
 0x6e4   : > { %v3124_v13 = vpop.f32.mrb[28].mxu0 }
 0x6e5   : > { %v1680_v8 = vpop.f32.mrb[29].mxu0 }
 0x6e6   : > { %v3125_v5 = vpop.f32.mrb[30].mxu0 }
 0x6e7   : > { %v1696_v9 = vpack.c.bf16 %v3125_v5, %v3124_v13  ;;  %v1683_v10 = vpop.f32.mrb[31].mxu0  ;;  %v3272_v13 = vld [vmem:[%s3577_s21 + $0x84] ss:$16 sps:$4 sm:$0xff]   ;;  %v3270_v5 = vld [vmem:[%s3577_s21 + $0x80] ss:$16 sps:$4 sm:$0xff]  }
 0x6e8   : > { %v1695_v7 = vpack.c.bf16 %v1683_v10, %v1680_v8  ;;  %v3275_v8 = vld [vmem:[%s3577_s21 + $0x8c] ss:$16 sps:$4 sm:$0xff]   ;;  %2261 = vmatprep.subr.bf16.mxu1 %v3272_v13  ;;  %v3276_v10 = vld [vmem:[%s3577_s21 + $0xa0] ss:$16 sps:$4 sm:$0xff]  }
 0x6e9   : > { %2262 = vmatpush1.bf16.msra.mxu1 %v3270_v5  ;;  %v3308_v13 = vld [vmem:[%s3582_s30 + $0x78] sm:$0xff]  }
 0x6ea   : > { %3130 = vmatprep.mubr.msk.bf16.mxu0 %vm1036_vm0, %v1695_v7  ;;  %v3278_v7 = vld [vmem:[%s3577_s21 + $0xa4] ss:$16 sps:$4 sm:$0xff]  }
 0x6eb   : > { %3131 = vmatmul.mubr.msk.bf16.vlgmr.msra.gmra.mrb[24].mxu0 %vm1036_vm0, %v1696_v9  ;;  %v3273_v9 = vld [vmem:[%s3577_s21 + $0x88] ss:$16 sps:$4 sm:$0xff]   ;;  %2263 = vmatprep.subr.bf16.mxu1 %v3278_v7 }
 0x6ed   : > { %2264 = vmatpush1.bf16.msra.mxu1 %v3276_v10 }
 0x732   : > { %v1872_v6 = vpop.xlane.xlu1 %1871 }
 0x734   : > { %v1869_v62 = vpop.xlane.xlu0 %1868 }
 0x735   : > { %3374 = vrcp.f32 %v1869_v62  ;;  %v3281_v62 = vld [vmem:[%s3577_s21 + $0xac] ss:$16 sps:$4 sm:$0xff]  }
 0x736   : > { %v1866_v11 = vpop.xlane.xlu1 %1865 }
 0x737   : > { %3376 = vrcp.f32 %v1866_v11  ;;  %v3284_v11 = vld [vmem:[%s3577_s21 + $0xc4] ss:$16 sps:$4 sm:$0xff]  }
 0x738   : > { %3378 = vrcp.f32 %v1872_v6  ;;  %v1863_v24 = vpop.xlane.xlu0 %1862  ;;  %v3279_v6 = vld [vmem:[%s3577_s21 + $0xa8] ss:$16 sps:$4 sm:$0xff]   ;;  %2265 = vmatprep.subr.bf16.mxu1 %v3284_v11 }
 0x739   : > { %3380 = vrcp.f32 %v1863_v24  ;;  %v3287_v24 = vld [vmem:[%s3577_s21 + $0xcc] ss:$16 sps:$4 sm:$0xff]  }
 0x73a   : > { %v1886_v61 = vpop.permute.xlu1 %1885 }
 0x73c   : > { %v1884_v26 = vpop.permute.xlu0 %1883 }
 0x73d   : > { %3142 = vmatprep.subr.bf16.mxu0 %v1884_v26 }
 0x73e   : > { %3143 = vmatpush3.bf16.msra.mxu0 %v1884_v26  ;;  %v3282_v26 = vld [vmem:[%s3577_s21 + $0xc0] ss:$16 sps:$4 sm:$0xff]  }
 0x73f   : > { %3144 = vmatprep.subr.bf16.mxu0 %v1886_v61  ;;  %v3375_v16 = vpop.eup %3374  ;;  %2266 = vmatpush1.bf16.msra.mxu1 %v3282_v26 }
 0x740   : > { %v1878_v18 = vmul.f32 %v3375_v16, %v3371_v1  ;;  %v3293_v16 = vld [vmem:[%s3577_s21 + $0xec] ss:$16 sps:$4 sm:$0xff]  }
 0x741   : > { %v3377_v63 = vpop.eup %3376 }
 0x742   : > { %v3379_v17 = vpop.eup %3378  ;;  %3145 = vmatpush3.bf16.msra.mxu0 %v1886_v61  ;;  %v1876_v20 = vmul.f32 %v3377_v63, %v3369_v14  ;;  %v3285_v61 = vld [vmem:[%s3577_s21 + $0xc8] ss:$16 sps:$4 sm:$0xff]   ;;  %v3288_v63 = vld [vmem:[%s3577_s21 + $0xe0] ss:$16 sps:$4 sm:$0xff]  }
 0x743   : > { %v3381_v0 = vpop.eup %3380  ;;  %3150 = vmatprep.subr.bf16.mxu0 %v3244_v15  ;;  %v1880_v21 = vmul.f32 %v3379_v17, %v3367_v59  ;;  %v3291_v17 = vld [vmem:[%s3577_s21 + $0xe8] ss:$16 sps:$4 sm:$0xff]  }
 0x744   : > { %v1874_v19 = vmul.f32 %v3381_v0, %v3373_v12  ;;  %v3269_v12 = vld [vmem:[%s3577_s21 + $0x6c] ss:$16 sps:$4 sm:$0xff]  }
 0x745   : > { %v1882_v23 = vpack.c.bf16 %v1880_v21, %v1878_v18 }
 0x746   : > { %v1881_v22 = vpack.c.bf16 %v1876_v20, %v1874_v19 }
 0x748   : > { %3146 = vmatprep.mubr.msk.bf16.mxu0 %vm1036_vm0, %v1881_v22 }
 0x749   : > { %3147 = vmatmul.mubr.msk.bf16.vlgmr.msra.gmra.mrb[32].mxu0 %vm1036_vm0, %v1882_v23 }
 0x74a   : > { %3151 = vmatpush3.bf16.msra.mxu0 %v3244_v15  ;;  %v3290_v15 = vld [vmem:[%s3577_s21 + $0xe4] ss:$16 sps:$4 sm:$0xff]  }
 0x74b   : > { %3152 = vmatprep.subr.bf16.mxu0 %v3245_v25  ;;  %2267 = vmatprep.subr.bf16.mxu1 %v3290_v15 }
 0x74c   : > { %2268 = vmatpush1.bf16.msra.mxu1 %v3288_v63 }
 0x74e   : > { %3153 = vmatpush3.bf16.msra.mxu0 %v3245_v25 }
 0x74f   : > { %2306 = vmatprep.subr.bf16.mxu0 %v3251_v35 }
 0x81c   : > { %v3148_v27 = vpop.f32.mrb[32].mxu0 }
 0x81d   : > { %v1929_v28 = vpop.f32.mrb[33].mxu0 }
 0x81e   : > { %v3149_v29 = vpop.f32.mrb[34].mxu0 }
 0x81f   : > { %v1945_v30 = vpack.c.bf16 %v3149_v29, %v3148_v27  ;;  %v1932_v32 = vpop.f32.mrb[35].mxu0 }
 0x820   : > { %v1944_v34 = vpack.c.bf16 %v1932_v32, %v1929_v28  ;;  %v2049_v32 = vld [vmem:[%s477_s13] sm:$0x1] }
 0x822   : > { %3154 = vmatprep.mubr.msk.bf16.mxu0 %vm1036_vm0, %v1944_v34  ;;  %v2050_v34 = vunpack.c.l.bf16 %v2049_v32 }
 0x823   : > { %3155 = vmatmul.mubr.msk.bf16.vlgmr.msra.gmra.mrb[24].mxu0 %vm1036_vm0, %v1945_v30 }
 0x824   : > { %2338 = vmatprep.mubr.bf16.mxu0 %v3468_v36  ;;  %2307 = vmatpush1.bf16.msra.mxu0 %v3249_v43  ;;  %v2054_v43 = vrot.slane %v2050_v34, %v3640_v56 }
 0x825   : > { %2308 = vmatprep.subr.bf16.mxu0 %v3257_v39 }
 0x828   : > { %2309 = vmatpush1.bf16.msra.mxu0 %v3255_v40 }
 0x829   : > { %2310 = vmatprep.subr.bf16.mxu0 %v3263_v42 }
 0x82c   : > { %2311 = vmatpush1.bf16.msra.mxu0 %v3261_v45 }
 0x82d   : > { %2312 = vmatprep.subr.bf16.mxu0 %v3269_v12  ;;  %v3305_v12 = vld [vmem:[%s3582_s30 + $0x28] sm:$0xff]  }
 0x830   : > { %2313 = vmatpush1.bf16.msra.mxu0 %v3267_v4  ;;  %v3307_v4 = vld [vmem:[%s3582_s30 + $0x30] sm:$0xff]  }
 0x831   : > { %2314 = vmatprep.subr.bf16.mxu0 %v3275_v8  ;;  %v3309_v8 = vld [vmem:[%s3582_s30 + $0x38] sm:$0xff]  }
 0x834   : > { %2315 = vmatpush1.bf16.msra.mxu0 %v3273_v9 }
 0x835   : > { %2316 = vmatprep.subr.bf16.mxu0 %v3281_v62 }
 0x838   : > { %2317 = vmatpush1.bf16.msra.mxu0 %v3279_v6 }
 0x839   : > { %2318 = vmatprep.subr.bf16.mxu0 %v3287_v24 }
 0x83c   : > { %2319 = vmatpush1.bf16.msra.mxu0 %v3285_v61 }
 0x83d   : > { %2320 = vmatprep.subr.bf16.mxu0 %v3293_v16 }
 0x840   : > { %2321 = vmatpush1.bf16.msra.mxu0 %v3291_v17 }
 0x8f6   : > { %v3156_v46 = vpop.f32.mrb[24].mxu0 }
 0x8f7   : > { %v1998_v47 = vpop.f32.mrb[25].mxu0  ;;  %v3929_v59 = vadd.f32 %v3425_v58, %v3156_v46  ;;  %v3300_v58 = vld [vmem:[%s3582_s30 + $0x58] sm:$0xff]  }
 0x8f8   : > { %v3921_v49 = vadd.f32 %v3422_v48, %v1998_v47  ;;  %v3157_v50 = vpop.f32.mrb[26].mxu0 }
 0x8f9   : > { %v2001_v51 = vpop.f32.mrb[27].mxu0  ;;  %v3923_v54 = vadd.f32 %v3423_v53, %v3157_v50  ;;  %v2023_v1 = vmul.f32 %v3929_v59, %v3929_v59  ;;  %v3294_v50 = vld [vmem:[%s3582_s30 + $0x40] sm:$0xff]   ;;  %v3296_v53 = vld [vmem:[%s3582_s30 + $0x48] sm:$0xff]  }
 0x8fa   : > { %v3925_v52 = vadd.f32 %v3424_v55, %v2001_v51  ;;  %v2021_v57 = vmul.f32 %v3921_v49, %v3921_v49  ;;  %v3295_v51 = vld [vmem:[%s3582_s30] sm:$0xff]   ;;  %2974 = vmatprep.subr.bf16.mxu1 %v3294_v50  ;;  %v3297_v55 = vld [vmem:[%s3582_s30 + $0x8] sm:$0xff]  }
 0x8fb   : > { %v2024_v60 = vmul.f32 %v3923_v54, %v3923_v54 }
 0x8fc   : > { %2025 = vadd.xlane.f32.xlu1 %v2021_v57  ;;  %v2022_v14 = vmul.f32 %v3925_v52, %v3925_v52  ;;  %v3299_v57 = vld [vmem:[%s3582_s30 + $0x10] sm:$0xff]  }
 0x8fe   : > { %2027 = vadd.xlane.f32.xlu0 %v2022_v14  ;;  %v3301_v14 = vld [vmem:[%s3582_s30 + $0x18] sm:$0xff]  }
 0x900   : > { %2031 = vadd.xlane.f32.xlu1 %v2024_v60  ;;  %v3302_v60 = vld [vmem:[%s3582_s30 + $0x60] sm:$0xff]  }
 0x902   : > { %2029 = vadd.xlane.f32.xlu0 %v2023_v1  ;;  %v3303_v1 = vld [vmem:[%s3582_s30 + $0x20] sm:$0xff]  }
 0x989   : > { %v2026_v0 = vpop.xlane.xlu1 %2025 }
 0x98a   : > { %v2033_v18 = vmul.f32 0.0078125, %v2026_v0 }
 0x98b   : > { %v2028_v19 = vpop.xlane.xlu0 %2027 }
 0x98c   : > { %v2037_v20 = vadd.f32 1e-06, %v2033_v18  ;;  %v2034_v21 = vmul.f32 0.0078125, %v2028_v19 }
 0x98d   : > { %v2032_v22 = vpop.xlane.xlu1 %2031 }
 0x98e   : > { %3382 = vrsqrt.f32 %v2037_v20  ;;  %v2038_v23 = vadd.f32 1e-06, %v2034_v21  ;;  %v2036_v25 = vmul.f32 0.0078125, %v2032_v22 }
 0x98f   : > { %v2030_v27 = vpop.xlane.xlu0 %2029 }
 0x990   : > { %3384 = vrsqrt.f32 %v2038_v23  ;;  %v2040_v28 = vadd.f32 1e-06, %v2036_v25  ;;  %v2035_v29 = vmul.f32 0.0078125, %v2030_v27 }
 0x992   : > { %v2039_v30 = vadd.f32 1e-06, %v2035_v29  ;;  %3386 = vrsqrt.f32 %v2040_v28 }
 0x994   : > { %3388 = vrsqrt.f32 %v2039_v30 }
 0x998   : > { %v3383_v31 = vpop.eup %3382 }
 0x999   : > { %v2045_v37 = vmul.f32 %v3383_v31, %v3921_v49 }
 0x99a   : > { %v3385_v35 = vpop.eup %3384 }
 0x99b   : > { %v2046_v38 = vmul.f32 %v3385_v35, %v3925_v52  ;;  %v2055_v33 = vmul.f32 %v2054_v43, %v2045_v37 }
 0x99c   : > { %v3387_v39 = vpop.eup %3386 }
 0x99d   : > { %v2056_v40 = vmul.f32 %v2054_v43, %v2046_v38  ;;  %v2048_v45 = vmul.f32 %v3387_v39, %v3923_v54 }
 0x99e   : > { %v3389_v41 = vpop.eup %3388 }
 0x99f   : > { %v2059_v42 = vpack.c.bf16 %v2056_v40, %v2055_v33  ;;  %v2047_v44 = vmul.f32 %v3389_v41, %v3929_v59  ;;  %v2058_v47 = vmul.f32 %v2054_v43, %v2048_v45 }
 0x9a1   : > { %2286 = vmatmul.mubr.bf16.vlgmr.msra.gmra.mrb[20].mxu1 %v2059_v42  ;;  %2339 = vmatmul.mubr.bf16.vlgmr.msra.gmra.mrb[36].mxu0 %v2059_v42  ;;  %v2057_v46 = vmul.f32 %v2054_v43, %v2047_v44 }
 0x9a2   : > { %2295 = vmatprep.mubr.bf16.mxu1 %v3468_v36  ;;  %2348 = vmatprep.mubr.bf16.mxu0 %v3468_v36  ;;  %v3298_v36 = vld [vmem:[%s3582_s30 + $0x50] sm:$0xff]  }
 0x9a3   : > { %v2060_v48 = vpack.c.bf16 %v2058_v47, %v2057_v46  ;;  %2975 = vmatpush3.bf16.msra.mxu1 %v3295_v51 }
 0x9a4   : > { %2976 = vmatprep.subr.bf16.mxu1 %v3296_v53 }
 0x9a7   : > { %2977 = vmatpush3.bf16.msra.mxu1 %v3297_v55 }
 0x9a8   : > { %2978 = vmatprep.subr.bf16.mxu1 %v3298_v36 }
 0x9a9   : > { %2296 = vmatmul.mubr.bf16.gmra.mrb[24].mxu1 %v2060_v48  ;;  %2349 = vmatmul.mubr.bf16.gmra.mrb[40].mxu0 %v2060_v48 }
 0x9ab   : > { %2979 = vmatpush3.bf16.msra.mxu1 %v3299_v57 }
 0x9ac   : > { %2980 = vmatprep.subr.bf16.mxu1 %v3300_v58 }
 0x9af   : > { %2981 = vmatpush3.bf16.msra.mxu1 %v3301_v14 }
 0x9b0   : > { %2982 = vmatprep.subr.bf16.mxu1 %v3302_v60 }
 0x9b3   : > { %2983 = vmatpush3.bf16.msra.mxu1 %v3303_v1 }
 0x9b4   : > { %2984 = vmatprep.subr.bf16.mxu1 %v3304_v2 }
 0x9b7   : > { %2985 = vmatpush3.bf16.msra.mxu1 %v3305_v12 }
 0x9b8   : > { %2986 = vmatprep.subr.bf16.mxu1 %v3306_v3 }
 0x9bb   : > { %2987 = vmatpush3.bf16.msra.mxu1 %v3307_v4 }
 0x9bc   : > { %2988 = vmatprep.subr.bf16.mxu1 %v3308_v13 }
 0x9bf   : > { %2989 = vmatpush3.bf16.msra.mxu1 %v3309_v8 }
 0xa74   : > { %v2287_v5 = vpop.f32.mrb[20].mxu1  ;;  %v2340_v9 = vpop.f32.mrb[36].mxu0 }
 0xa75   : > { %v2855_v10 = vmul.f32 -1.442695, %v2287_v5  ;;  %v2289_v7 = vpop.f32.mrb[21].mxu1  ;;  %v2342_v6 = vpop.f32.mrb[37].mxu0 }
 0xa76   : > { %v2856_v62 = vmul.f32 -1.442695, %v2289_v7  ;;  %v2291_v11 = vpop.f32.mrb[22].mxu1  ;;  %v2344_v24 = vpop.f32.mrb[38].mxu0 }
 0xa77   : > { %3390 = vpow2.f32 %v2855_v10  ;;  %v2857_v26 = vmul.f32 -1.442695, %v2291_v11  ;;  %v2293_v61 = vpop.f32.mrb[23].mxu1  ;;  %v2346_v15 = vpop.f32.mrb[39].mxu0 }
 0xa78   : > { %3392 = vpow2.f32 %v2856_v62  ;;  %v2858_v16 = vmul.f32 -1.442695, %v2293_v61 }
 0xa79   : > { %3394 = vpow2.f32 %v2857_v26 }
 0xa7a   : > { %3396 = vpow2.f32 %v2858_v16 }
 0xa7c   : > { %v2297_v63 = vpop.f32.mrb[24].mxu1  ;;  %v2350_v17 = vpop.f32.mrb[40].mxu0 }
 0xa7d   : > { %v2859_v0 = vmul.f32 -1.442695, %v2297_v63  ;;  %v2299_v18 = vpop.f32.mrb[25].mxu1  ;;  %v2352_v19 = vpop.f32.mrb[41].mxu0 }
 0xa7e   : > { %v2860_v20 = vmul.f32 -1.442695, %v2299_v18  ;;  %v2301_v21 = vpop.f32.mrb[26].mxu1  ;;  %v2354_v22 = vpop.f32.mrb[42].mxu0 }
 0xa7f   : > { %3398 = vpow2.f32 %v2859_v0  ;;  %v2861_v23 = vmul.f32 -1.442695, %v2301_v21  ;;  %v2303_v25 = vpop.f32.mrb[27].mxu1  ;;  %v2356_v27 = vpop.f32.mrb[43].mxu0 }
 0xa80   : > { %3400 = vpow2.f32 %v2860_v20  ;;  %v2862_v28 = vmul.f32 -1.442695, %v2303_v25 }
 0xa81   : > { %v3391_v29 = vpop.eup %3390  ;;  %3402 = vpow2.f32 %v2861_v23 }
 0xa82   : > { %v3393_v30 = vpop.eup %3392  ;;  %v2383_v32 = vadd.f32 1.0, %v3391_v29  ;;  %3404 = vpow2.f32 %v2862_v28 }
 0xa83   : > { %v3395_v34 = vpop.eup %3394  ;;  %v2384_v31 = vadd.f32 1.0, %v3393_v30 }
 0xa84   : > { %v3397_v37 = vpop.eup %3396  ;;  %3406 = vrcp.f32 %v2383_v32  ;;  %v2385_v43 = vadd.f32 1.0, %v3395_v34 }
 0xa85   : > { %3408 = vrcp.f32 %v2384_v31  ;;  %v2386_v35 = vadd.f32 1.0, %v3397_v37 }
 0xa86   : > { %3410 = vrcp.f32 %v2385_v43 }
 0xa87   : > { %3412 = vrcp.f32 %v2386_v35 }
 0xa89   : > { %v3399_v38 = vpop.eup %3398 }
 0xa8a   : > { %v3401_v39 = vpop.eup %3400  ;;  %v2387_v33 = vadd.f32 1.0, %v3399_v38 }
 0xa8b   : > { %v3403_v40 = vpop.eup %3402  ;;  %v2388_v41 = vadd.f32 1.0, %v3401_v39 }
 0xa8c   : > { %v3405_v42 = vpop.eup %3404  ;;  %3414 = vrcp.f32 %v2387_v33  ;;  %v2389_v44 = vadd.f32 1.0, %v3403_v40 }
 0xa8d   : > { %3416 = vrcp.f32 %v2388_v41  ;;  %v2390_v45 = vadd.f32 1.0, %v3405_v42 }
 0xa8e   : > { %v3407_v46 = vpop.eup %3406  ;;  %3418 = vrcp.f32 %v2389_v44 }
 0xa8f   : > { %v3409_v47 = vpop.eup %3408  ;;  %v2407_v48 = vmul.f32 %v3407_v46, %v2287_v5  ;;  %3420 = vrcp.f32 %v2390_v45 }
 0xa90   : > { %v3411_v50 = vpop.eup %3410  ;;  %v2408_v51 = vmul.f32 %v3409_v47, %v2289_v7 }
 0xa91   : > { %v3413_v53 = vpop.eup %3412  ;;  %v2415_v55 = vmul.f32 %v2407_v48, %v2340_v9  ;;  %v2409_v36 = vmul.f32 %v3411_v50, %v2291_v11 }
 0xa92   : > { %v2416_v57 = vmul.f32 %v2408_v51, %v2342_v6  ;;  %v2410_v58 = vmul.f32 %v3413_v53, %v2293_v61 }
 0xa93   : > { %v2417_v14 = vmul.f32 %v2409_v36, %v2344_v24 }
 0xa94   : > { %v2418_v60 = vmul.f32 %v2410_v58, %v2346_v15 }
 0xa95   : > { %v2423_v1 = vpack.c.bf16 %v2417_v14, %v2415_v55 }
 0xa96   : > { %v3415_v2 = vpop.eup %3414  ;;  %v2424_v12 = vpack.c.bf16 %v2418_v60, %v2416_v57 }
 0xa97   : > { %v3417_v3 = vpop.eup %3416  ;;  %v2411_v4 = vmul.f32 %v3415_v2, %v2297_v63 }
 0xa98   : > { %v3419_v13 = vpop.eup %3418  ;;  %v2412_v8 = vmul.f32 %v3417_v3, %v2299_v18  ;;  %2587 = vmatprep.mubr.bf16.mxu1 %v2424_v12 }
 0xa99   : > { %v3421_v10 = vpop.eup %3420  ;;  %v2419_v5 = vmul.f32 %v2411_v4, %v2350_v17  ;;  %v2413_v62 = vmul.f32 %v3419_v13, %v2301_v21  ;;  %2588 = vmatmul.mubr.bf16.vlgmr.msra.gmra.mrb[28].mxu1 %v2423_v1 }
 0xa9a   : > { %v2420_v7 = vmul.f32 %v2412_v8, %v2352_v19  ;;  %v2414_v26 = vmul.f32 %v3421_v10, %v2303_v25 }
 0xa9b   : > { %v2421_v9 = vmul.f32 %v2413_v62, %v2354_v22 }
 0xa9c   : > { %v2422_v11 = vmul.f32 %v2414_v26, %v2356_v27 }
 0xa9d   : > { %v2425_v6 = vpack.c.bf16 %v2421_v9, %v2419_v5 }
 0xa9e   : > { %v2426_v61 = vpack.c.bf16 %v2422_v11, %v2420_v7 }
 0xaa0   : > { %2595 = vmatprep.mubr.bf16.mxu1 %v2426_v61 }
 0xaa1   : > { %2596 = vmatmul.mubr.bf16.gmra.mrb[32].mxu1 %v2425_v6 }
 0xb6c   : > { %v2990_v24 = vpop.f32.mrb[28].mxu1 }
 0xb6d   : > { %v2991_v15 = vpop.f32.mrb[29].mxu1 }
 0xb6e   : > { %v2992_v16 = vadd.f32 %v2991_v15, %v2990_v24  ;;  %v2993_v0 = vpop.f32.mrb[30].mxu1 }
 0xb6f   : > { %v2994_v63 = vpop.f32.mrb[31].mxu1 }
 0xb70   : > { %v2604_v18 = vadd.f32 %v2992_v16, %v3921_v49  ;;  %v2995_v20 = vadd.f32 %v2994_v63, %v2993_v0 }
 0xb72   : > { %2608 = vst [vmem:[#allocation2] sm:$0xff] %v2604_v18  ;;  %v2605_v17 = vadd.f32 %v2995_v20, %v3925_v52 }
 0xb74   : > { %2609 = vst [vmem:[#allocation2 + $0x8] sm:$0xff] %v2605_v17  ;;  %v2996_v19 = vpop.f32.mrb[32].mxu1  ;;  %v2616_v49 = vmul.f32 (!%p2879_p5), %v2605_v17, %v2605_v17 }
 0xb75   : > { %v2997_v21 = vpop.f32.mrb[33].mxu1 }
 0xb76   : > { %v2998_v22 = vadd.f32 %v2997_v21, %v2996_v19  ;;  %v2999_v23 = vpop.f32.mrb[34].mxu1  ;;  %2615 = sbr.rel (%p2879_p5) target bundleno = 3107 (0xc23), region = 76  ;;  %2618 = vadd.xlane.f32.xlu0 (!%p2879_p5), %v2616_v49 }
 0xb77   : > { %v3000_v25 = vpop.f32.mrb[35].mxu1 }
 0xb78   : > { %v2606_v27 = vadd.f32 %v2998_v22, %v3929_v59  ;;  %v3001_v28 = vadd.f32 %v3000_v25, %v2999_v23  ;;  %v2630_v59 = vld [vmem:[%s4031_s11] sm:$0x1] (!%p2879_p5) }
 0xb7a   : > { %2610 = vst [vmem:[#allocation2 + $0x10] sm:$0xff] %v2606_v27  ;;  %v2607_v29 = vadd.f32 %v3001_v28, %v3923_v54  ;;  %v2631_v54 = vunpack.c.l.bf16 (!%p2879_p5), %v2630_v59 }
 0xb7c   : > { %2611 = vst [vmem:[#allocation2 + $0x18] sm:$0xff] %v2607_v29  ;;  %v2617_v30 = vmul.f32 (!%p2879_p5), %v2607_v29, %v2607_v29  ;;  %v2635_v38 = vrot.slane (!%p2879_p5), %v2631_v54, %v3640_v56 }
 0xb7e   : > { %2620 = vadd.xlane.f32.xlu0 %v2617_v30 }
 0xc03   : > { %v2619_v52 = vpop.xlane.xlu0 %2618 }
 0xc04   : > { %v2622_v32 = vmul.f32 0.0078125, %v2619_v52 }
 0xc06   : > { %v2624_v34 = vadd.f32 1e-06, %v2622_v32 }
 0xc08   : > { %3426 = vrsqrt.f32 %v2624_v34 }
 0xc0b   : > { %v2621_v31 = vpop.xlane.xlu0 %2620 }
 0xc0c   : > { %v2623_v37 = vmul.f32 0.0078125, %v2621_v31 }
 0xc0e   : > { %v2625_v43 = vadd.f32 1e-06, %v2623_v37 }
 0xc10   : > { %3428 = vrsqrt.f32 %v2625_v43 }
 0xc12   : > { %v3427_v35 = vpop.eup %3426 }
 0xc13   : > { %v2628_v39 = vmul.f32 %v3427_v35, %v2605_v17 }
 0xc15   : > { %v2636_v40 = vmul.f32 %v2635_v38, %v2628_v39 }
 0xc17   : > { %v2639_v44 = vrot.slane %v2636_v40, 4 }
 0xc1a   : > { %v3429_v33 = vpop.eup %3428 }
 0xc1b   : > { %v2629_v41 = vmul.f32 %v3429_v33, %v2607_v29 }
 0xc1d   : > { %v2637_v42 = vmul.f32 %v2635_v38, %v2629_v41 }
 0xc1f   : > { %v2642_v45 = vrot.slane %v2637_v42, 3 }
 0xc21   : > { %v2645_v46 = vsel %vm2644_vm1, %v2639_v44, %v2642_v45 }
 0xc22   : > { %2646 = vst [vmem:[#allocation3] sm:$0x3] %v2645_v46 }
 0xc23 PF: > { %p3183_p6 = scmp.eq.s32.totalorder %s3544_s22, 1  ;;  %s3472_s30 = smov [#allocation3]  }
 0xc24   : > { %s2654_s25 = sshll.u32 %s3472_s30, 4  ;;  %s2655_s25 = int_to_ptr.vmem [resolvable:$true] %s2654_s25 }
 0xc25   : > { %s3430_s29 = scalar_lea.vmem %s2655_s25, 32  ;;  %p3437_p10 = scmp.lt.s32.totalorder %s2655_s25, %s2655_s25 }
 0xc26   : > { %p3431_p7 = scmp.ne.s32.totalorder %s2655_s25, %s3430_s29  ;;  %p3438_p11 = scmp.lt.s32.totalorder %s3430_s29, %s3430_s29 }
 0xc28   : > { %p3432_p8 = pnand %p3431_p7, %p3183_p6  ;;  %p3439_p12 = por %p3438_p11, %p3437_p10 }
 0xc2a   : > { %p3433_p9 = pneg %p3432_p8 }
 0xc2c   : > { %p3440_p13 = pnand %p3439_p12, %p3433_p9 }
 0xc2e   : > { %3443 = shalt.err (!%p3440_p13)
}
 0xc2f   : > { %s4038_s28 = sld [smem:[#allocation7_spill]] }
 0xc35   : > { %s3444_s15 = scalar_lea.hbm %s4038_s28, 32 }
 0xc36   : > { %p3445_p0 = scmp.ne.s32.totalorder %s4038_s28, %s3444_s15  ;;  %p3450_p3 = scmp.lt.u32.totalorder %s3444_s15, %s4038_s28 }
 0xc38   : > { %p3446_p1 = pnand %p3445_p0, %p3183_p6 }
 0xc3a   : > { %p3447_p2 = pneg %p3446_p1 }
 0xc3c   : > { %p3452_p4 = pnand %p3450_p3, %p3447_p2 }
 0xc3e   : > { %3455 = shalt.err (!%p3452_p4)
}
 0xc3f   : > { %3180 = dma.vmem_to_hbm [thread:$0]  (%p3183_p6), %s2655_s25, 32, %s4038_s28, [#allocation4]  }
 0xc40   : > { %3461 = dma.done.wait (%p3183_p6), [#allocation4], 32  }
 0xc41   : > { %3463 = vsyncadd (%p3183_p6), [#allocation4], 4294967264 }
 0xc42 PF: > { %s4039_s24 = sld [smem:[#allocation6_spill]] }
 0xc48   : > { %s23_s21 = sadd.s32 1, %s4039_s24  }
 0xc49   : > { %p20_p5 = scmp.ge.s32.totalorder %s23_s21, 4  }
 0xc4b   :  { %22 = sbr.rel (!%p20_p5) target bundleno = 3 (0x3), region = 118 }
 0xc52   :  { %2667 = vsyncpa [#allocation4], 1 }
 0xc53   :  { %2669 = vsyncpa [#allocation4 + $0x1], 1 }

</bundles_post_ra>
